<compile_context>
chip_gen: v5e
topology: v5e:2x2
jax: 0.10.0
libtpu: 0.0.40
codegen_flags: <defaults>
</compile_context>

<pallas_src>
import functools
import math
from typing import NamedTuple, Tuple

import jax
import jax.numpy as jnp
from jax.experimental import pallas as pl
from jax.experimental.pallas import tpu as pltpu

_LOG2PI = math.log(2.0 * math.pi)
_LANE = 128
_SUBLANE = 8


def _round_up(x, m):
    return (x + m - 1) // m * m


def _pad2d(a, rows, cols):
    r, c = a.shape
    return jnp.pad(a, ((0, rows - r), (0, cols - c)))


def _softplus(x):
    # Numerically stable softplus log(1 + exp(x)).
    return jnp.maximum(x, 0.0) + jnp.log1p(jnp.exp(-jnp.abs(x)))


def _fold_to_sublane(t):
    """Sum groups of 8 rows of a (r, fp) tile -> (8, fp), VPU adds only."""
    acc = t[0:_SUBLANE, :]
    for g in range(1, t.shape[0] // _SUBLANE):
        acc = acc + t[g * _SUBLANE:(g + 1) * _SUBLANE, :]
    return acc


class _Meta(NamedTuple):
    in_size: int
    h1: int
    h2: int
    out_size: int
    d0p: int                 # padded input feature dim (lane multiple)
    fp: int                  # common padded hidden/output feature dim
    r: Tuple[int, int, int]  # active (sublane-rounded) rows per layer
    kp: Tuple[int, int, int]  # full padded K per layer
    p_offs: Tuple[int, int, int]
    e_offs: Tuple[int, int, int]
    eps_rows: int


# --------------------------------------------------------------------------
# Kernels
# --------------------------------------------------------------------------
def _bayes_mlp_train_kernel(x_ref, p_ref, e_ref, out_ref, kl_ref, *,
                            meta, sigma_prior):
    fp = meta.fp
    in_dims = (meta.in_size, meta.h1, meta.h2)
    out_dims = (meta.h1, meta.h2, meta.out_size)
    # lpw of layer3 is dropped by the original module; layer2 counted twice.
    lp_scale = (1.0, 2.0, 0.0)

    h = x_ref[...]

    acc_q_w = jnp.zeros((_SUBLANE, fp), jnp.float32)
    acc_q_b = jnp.zeros((1, fp), jnp.float32)
    acc_p_w = jnp.zeros((_SUBLANE, fp), jnp.float32)
    acc_p_b = jnp.zeros((1, fp), jnp.float32)

    for li in range(3):
        kp, r = meta.kp[li], meta.r[li]
        po, eo = meta.p_offs[li], meta.e_offs[li]
        in_sz, out_sz = in_dims[li], out_dims[li]

        # Static, 8-row-aligned slices out of the packed parameter / eps arrays.
        wmu_top = p_ref[po: po + r, :]                           # (r, fp)
        wls = p_ref[po + kp: po + kp + r, :]                     # (r, fp)
        bmu = p_ref[po + kp + r: po + kp + r + 1, :]             # (1, fp)
        bls = p_ref[po + kp + r + 1: po + kp + r + 2, :]         # (1, fp)
        eps_w = e_ref[eo: eo + r, :]                             # (r, fp)
        eps_b = e_ref[eo + r: eo + r + 1, :]                     # (1, fp)

        rows = jax.lax.broadcasted_iota(jnp.int32, (r, fp), 0)
        cols = jax.lax.broadcasted_iota(jnp.int32, (r, fp), 1)
        w_mask = (rows < in_sz) & (cols < out_sz)
        b_mask = jax.lax.broadcasted_iota(jnp.int32, (1, fp), 1) < out_sz

        # Reparameterised sample (only on active rows): W - W_mu = softplus * eps.
        # eps is standard normal; fold sigma_prior (eps ~ N(0, sigma_prior)) here.
        dw = jnp.where(w_mask, (sigma_prior * _softplus(wls)) * eps_w, 0.0)
        db = jnp.where(b_mask, (sigma_prior * _softplus(bls)) * eps_b, 0.0)
        w_top = wmu_top + dw
        b = bmu + db

        # Full-K weight tile for the MXU: padded rows are exactly zero.
        if kp > r:
            w = jnp.concatenate(
                [w_top, jnp.zeros((kp - r, fp), jnp.float32)], axis=0)
        else:
            w = w_top

        h = jnp.dot(h, w, preferred_element_type=jnp.float32) + b
        if li < 2:
            h = jnp.maximum(h, 0.0)

        # lqw: log N(W; W_mu, exp(W_logsigma))  (std = exp(logsigma) — reference
        # quirk, sampling uses softplus). z = dw*exp(-wls) avoids exp(-2*wls)
        # overflow for strongly negative trained logsigma.
        z_w = dw * jnp.exp(-wls)
        z_b = db * jnp.exp(-bls)
        lq_w = jnp.where(w_mask, (-0.5 * _LOG2PI) - wls - 0.5 * z_w * z_w, 0.0)
        lq_b = jnp.where(b_mask, (-0.5 * _LOG2PI) - bls - 0.5 * z_b * z_b, 0.0)
        acc_q_w = acc_q_w + _fold_to_sublane(lq_w)
        acc_q_b = acc_q_b + lq_b

        # lpw: log N(W; 0, sigma_prior) — skipped entirely for layer3.
        if lp_scale[li]:
            c_prior = -0.5 * _LOG2PI - math.log(sigma_prior)
            inv_2s2 = 1.0 / (2.0 * sigma_prior * sigma_prior)
            lp_w = jnp.where(w_mask, c_prior - (w_top * w_top) * inv_2s2, 0.0)
            lp_b = jnp.where(b_mask, c_prior - (b * b) * inv_2s2, 0.0)
            acc_p_w = acc_p_w + lp_scale[li] * _fold_to_sublane(lp_w)
            acc_p_b = acc_p_b + lp_scale[li] * lp_b

    out_ref[...] = h.astype(out_ref.dtype)
    # Single merged scalar output: [lpw, lqw].
    kl_ref[0] = jnp.sum(acc_p_w) + jnp.sum(acc_p_b)
    kl_ref[1] = jnp.sum(acc_q_w) + jnp.sum(acc_q_b)


def _bayes_mlp_infer_kernel(x_ref, p_ref, out_ref, *, meta):
    # Mean path: ((x@W1mu+b1).relu() @ W2mu + b2).relu() @ W3mu + b3.
    h = x_ref[...]
    for li in range(3):
        kp, r, po = meta.kp[li], meta.r[li], meta.p_offs[li]
        w = p_ref[po: po + kp, :]
        bmu = p_ref[po + kp + r: po + kp + r + 1, :]
        h = jnp.dot(h, w, preferred_element_type=jnp.float32) + bmu
        if li < 2:
            h = jnp.maximum(h, 0.0)
    out_ref[...] = h.astype(out_ref.dtype)


# --------------------------------------------------------------------------
# Host-side preparation (done ONCE) + forward wrapper
# --------------------------------------------------------------------------
def prepare_bayesian_mlp(params, sigma_prior):
    """Pad + pack all parameters once into a single lane-dense array."""
    in_size, h1 = params["layer1"]["W_mu"].shape
    h2 = params["layer2"]["W_mu"].shape[1]
    out_size = params["layer3"]["W_mu"].shape[1]

    d0p = _round_up(in_size, _LANE)
    fp = _round_up(max(h1, h2, out_size), _LANE)
    r = (_round_up(in_size, _SUBLANE), _round_up(h1, _SUBLANE),
         _round_up(h2, _SUBLANE))
    kp = (d0p, fp, fp)

    def pack_layer(name, kpi, ri):
        p = params[name]
        wmu = _pad2d(jnp.asarray(p["W_mu"], jnp.float32), kpi, fp)
        wls = _pad2d(jnp.asarray(p["W_logsigma"], jnp.float32), ri, fp)
        bias = jnp.zeros((_SUBLANE, fp), jnp.float32)
        bias = bias.at[0, :p["b_mu"].shape[0]].set(
            jnp.asarray(p["b_mu"], jnp.float32))
        bias = bias.at[1, :p["b_logsigma"].shape[0]].set(
            jnp.asarray(p["b_logsigma"], jnp.float32))
        return jnp.concatenate([wmu, wls, bias], axis=0)

    blocks = [pack_layer("layer1", kp[0], r[0]),
              pack_layer("layer2", kp[1], r[1]),
              pack_layer("layer3", kp[2], r[2])]
    packed = jnp.concatenate(blocks, axis=0)

    p_offs = (0, blocks[0].shape[0], blocks[0].shape[0] + blocks[1].shape[0])
    e_lens = tuple(ri + _SUBLANE for ri in r)
    e_offs = (0, e_lens[0], e_lens[0] + e_lens[1])

    meta = _Meta(in_size=in_size, h1=h1, h2=h2, out_size=out_size,
                 d0p=d0p, fp=fp, r=r, kp=kp, p_offs=p_offs, e_offs=e_offs,
                 eps_rows=sum(e_lens))
    return {"packed": packed, "meta": meta, "sigma_prior": float(sigma_prior)}


def draw_bayesian_eps(key, prepared):
    """One packed standard-normal eps array (scaled by sigma_prior in-kernel)."""
    meta = prepared["meta"]
    return jax.random.normal(key, (meta.eps_rows, meta.fp), jnp.float32)


def bayesian_mlp_forward(prepared, x, eps=None, key=None, infer=False):
    """Mirrors BayesianMLP.forward; returns (lpw, lqw, output)."""
    meta = prepared["meta"]
    packed = prepared["packed"]
    batch = x.shape[0]
    bp = _round_up(max(batch, 1), _SUBLANE)
    xp = _pad2d(jnp.asarray(x, jnp.float32), bp, meta.d0p)

    vmem = pl.BlockSpec(memory_space=pltpu.MemorySpace.VMEM)

    if infer:
        out = pl.pallas_call(
            functools.partial(_bayes_mlp_infer_kernel, meta=meta),
            out_shape=jax.ShapeDtypeStruct((bp, meta.fp), jnp.float32),
            in_specs=[vmem, vmem],
            out_specs=vmem,
        )(xp, packed)
        zero = jnp.float32(0.0)
        return zero, zero, out[:batch, :meta.out_size]

    if eps is None:
        if key is None:
            raise ValueError("training path needs `eps` or `key`")
        eps = draw_bayesian_eps(key, prepared)

    smem = pl.BlockSpec(memory_space=pltpu.MemorySpace.SMEM)
    out, kl = pl.pallas_call(
        functools.partial(_bayes_mlp_train_kernel, meta=meta,
                          sigma_prior=prepared["sigma_prior"]),
        out_shape=(jax.ShapeDtypeStruct((bp, meta.fp), jnp.float32),
                   jax.ShapeDtypeStruct((2,), jnp.float32)),
        in_specs=[vmem, vmem, vmem],
        out_specs=(vmem, smem),
    )(xp, packed, eps)
    return kl[0], kl[1], out[:batch, :meta.out_size]


# --------------------------------------------------------------------------
# Init + pure-JAX reference (for the self-test)
# --------------------------------------------------------------------------
def init_bayesian_linear(key, input_size, output_size):
    k1, k2, k3, k4 = jax.random.split(key, 4)
    return {
        "W_mu": 0.01 * jax.random.normal(k1, (input_size, output_size), jnp.float32),
        "W_logsigma": 0.01 * jax.random.normal(k2, (input_size, output_size), jnp.float32),
        "b_mu": jax.random.uniform(k3, (output_size,), jnp.float32, -0.01, 0.01),
        "b_logsigma": jax.random.uniform(k4, (output_size,), jnp.float32, -0.01, 0.01),
    }


def init_bayesian_mlp(key, input_size, hidden_size1, hidden_size2, output_size):
    k1, k2, k3 = jax.random.split(key, 3)
    return {
        "layer1": init_bayesian_linear(k1, input_size, hidden_size1),
        "layer2": init_bayesian_linear(k2, hidden_size1, hidden_size2),
        "layer3": init_bayesian_linear(k3, hidden_size2, output_size),
    }


def _ref_forward(params, x, sigma_prior, eps_packed, meta):
    """Pure-JAX reference reproducing the PyTorch module with the same eps."""
    def log_gauss(v, mu, sigma):
        return -0.5 * _LOG2PI - jnp.log(sigma) - (v - mu) ** 2 / (2.0 * sigma ** 2)

    def log_gauss_logsigma(v, mu, logsigma):
        return (-0.5 * _LOG2PI - logsigma
                - (v - mu) ** 2 / (2.0 * jnp.exp(logsigma) ** 2))

    lpw_l, lqw_l, h = [], [], x
    for li, name in enumerate(["layer1", "layer2", "layer3"]):
        p = params[name]
        in_d, out_d = p["W_mu"].shape
        eo, ri = meta.e_offs[li], meta.r[li]
        eps_w = eps_packed[eo:eo + in_d, :out_d] * sigma_prior
        eps_b = eps_packed[eo + ri, :out_d] * sigma_prior
        W = p["W_mu"] + jnp.log1p(jnp.exp(p["W_logsigma"])) * eps_w
        b = p["b_mu"] + jnp.log1p(jnp.exp(p["b_logsigma"])) * eps_b
        out = h @ W + b
        lpw_l.append(jnp.sum(log_gauss(W, 0.0, sigma_prior))
                     + jnp.sum(log_gauss(b, 0.0, sigma_prior)))
        lqw_l.append(jnp.sum(log_gauss_logsigma(W, p["W_mu"], p["W_logsigma"]))
                     + jnp.sum(log_gauss_logsigma(b, p["b_mu"], p["b_logsigma"])))
        h = out if li == 2 else jnp.maximum(out, 0.0)
    return lpw_l[0] + 2.0 * lpw_l[1], lqw_l[0] + lqw_l[1] + lqw_l[2], h


if __name__ == "__main__":
    input_size, hidden1, hidden2, output_size = 32, 64, 64, 16
    batch = 2
    sigma_prior = 0.05

    root = jax.random.PRNGKey(0)
    k_params, k_input, k_eps = jax.random.split(root, 3)

    params = init_bayesian_mlp(k_params, input_size, hidden1, hidden2, output_size)
    x = jax.random.normal(k_input, (batch, input_size), jnp.float32)

    # Pad + pack parameters ONCE (reused across all forward calls).
    prepared = prepare_bayesian_mlp(params, sigma_prior)
    eps = draw_bayesian_eps(k_eps, prepared)

    # Training (sampled) path.
    lpw, lqw, out = bayesian_mlp_forward(prepared, x, eps=eps)
    jax.block_until_ready((lpw, lqw, out))
    assert out.shape == (batch, output_size)
    assert bool(jnp.all(jnp.isfinite(out)))
    assert bool(jnp.isfinite(lpw)) and bool(jnp.isfinite(lqw))

    lpw_r, lqw_r, out_r = _ref_forward(params, x, sigma_prior, eps, prepared["meta"])
    assert bool(jnp.allclose(out, out_r, atol=1e-4, rtol=1e-4))
    assert bool(jnp.allclose(lpw, lpw_r, rtol=2e-4, atol=5e-2))
    assert bool(jnp.allclose(lqw, lqw_r, rtol=2e-4, atol=5e-2))

    # Inference (mean) path.
    _, _, out_inf = bayesian_mlp_forward(prepared, x, infer=True)
    jax.block_until_ready(out_inf)

    h_ref = x
    for i, name in enumerate(["layer1", "layer2", "layer3"]):
        p = params[name]
        h_ref = h_ref @ p["W_mu"] + p["b_mu"]
        if i < 2:
            h_ref = jnp.maximum(h_ref, 0.0)
    assert bool(jnp.allclose(out_inf, h_ref, atol=1e-4, rtol=1e-4))

    print("KERNEL_OK")
</pallas_src>

<mosaic_0001>
module attributes {stable_mosaic.version = 11 : i64} {
  func.func @_bayes_mlp_train_kernel(%arg0: memref<8x128xf32, #tpu.memory_space<vmem>>, %arg1: memref<568x128xf32, #tpu.memory_space<vmem>>, %arg2: memref<184x128xf32, #tpu.memory_space<vmem>>, %arg3: memref<8x128xf32, #tpu.memory_space<vmem>>, %arg4: memref<2xf32, #tpu.memory_space<smem>>) attributes {dimension_semantics = [], scalar_prefetch = 0 : i64, scratch_operands = 0 : i64, tpu.core_type = #tpu.core_type<tc>} {
    %c0 = arith.constant 0 : index
    %c0_0 = arith.constant 0 : index
    %0 = vector.load %arg0[%c0, %c0_0] : memref<8x128xf32, #tpu.memory_space<vmem>>, vector<8x128xf32>
    %cst = arith.constant 0.000000e+00 : f32
    %1 = vector.broadcast %cst : f32 to vector<8x128xf32>
    %cst_1 = arith.constant 0.000000e+00 : f32
    %2 = vector.broadcast %cst_1 : f32 to vector<1x128xf32>
    %cst_2 = arith.constant 0.000000e+00 : f32
    %3 = vector.broadcast %cst_2 : f32 to vector<8x128xf32>
    %cst_3 = arith.constant 0.000000e+00 : f32
    %4 = vector.broadcast %cst_3 : f32 to vector<1x128xf32>
    %c0_4 = arith.constant 0 : index
    %c0_5 = arith.constant 0 : index
    %5 = vector.load %arg1[%c0_4, %c0_5] : memref<568x128xf32, #tpu.memory_space<vmem>>, vector<32x128xf32>
    %c128 = arith.constant 128 : index
    %c0_6 = arith.constant 0 : index
    %6 = vector.load %arg1[%c128, %c0_6] : memref<568x128xf32, #tpu.memory_space<vmem>>, vector<32x128xf32>
    %c160 = arith.constant 160 : index
    %c0_7 = arith.constant 0 : index
    %7 = vector.load %arg1[%c160, %c0_7] : memref<568x128xf32, #tpu.memory_space<vmem>>, vector<1x128xf32>
    %c161 = arith.constant 161 : index
    %c0_8 = arith.constant 0 : index
    %8 = vector.load %arg1[%c161, %c0_8] : memref<568x128xf32, #tpu.memory_space<vmem>>, vector<1x128xf32>
    %c0_9 = arith.constant 0 : index
    %c0_10 = arith.constant 0 : index
    %9 = vector.load %arg2[%c0_9, %c0_10] : memref<184x128xf32, #tpu.memory_space<vmem>>, vector<32x128xf32>
    %c32 = arith.constant 32 : index
    %c0_11 = arith.constant 0 : index
    %10 = vector.load %arg2[%c32, %c0_11] : memref<184x128xf32, #tpu.memory_space<vmem>>, vector<1x128xf32>
    %11 = tpu.iota {dimensions = array<i32: 0>} : vector<32x128xi32>
    %12 = tpu.iota {dimensions = array<i32: 1>} : vector<32x128xi32>
    %c32_i32 = arith.constant 32 : i32
    %13 = vector.broadcast %c32_i32 : i32 to vector<32x128xi32>
    %14 = arith.cmpi slt, %11, %13 : vector<32x128xi32>
    %c64_i32 = arith.constant 64 : i32
    %15 = vector.broadcast %c64_i32 : i32 to vector<32x128xi32>
    %16 = arith.cmpi slt, %12, %15 : vector<32x128xi32>
    %17 = arith.andi %14, %16 : vector<32x128xi1>
    %18 = tpu.iota {dimensions = array<i32: 1>} : vector<1x128xi32>
    %c64_i32_12 = arith.constant 64 : i32
    %19 = vector.broadcast %c64_i32_12 : i32 to vector<1x128xi32>
    %20 = arith.cmpi slt, %18, %19 : vector<1x128xi32>
    %cst_13 = arith.constant 0.000000e+00 : f32
    %21 = vector.broadcast %cst_13 : f32 to vector<32x128xf32>
    %22 = arith.maximumf %6, %21 : vector<32x128xf32>
    %23 = math.absf %6 : vector<32x128xf32>
    %cst_14 = arith.constant 0.000000e+00 : f32
    %24 = vector.broadcast %cst_14 : f32 to vector<32x128xf32>
    %25 = arith.subf %24, %23 : vector<32x128xf32>
    %26 = math.exp %25 : vector<32x128xf32>
    %27 = math.log1p %26 : vector<32x128xf32>
    %28 = arith.addf %22, %27 : vector<32x128xf32>
    %cst_15 = arith.constant 5.000000e-02 : f32
    %29 = vector.broadcast %cst_15 : f32 to vector<32x128xf32>
    %30 = arith.mulf %29, %28 : vector<32x128xf32>
    %31 = arith.mulf %30, %9 : vector<32x128xf32>
    %cst_16 = arith.constant 0.000000e+00 : f32
    %32 = vector.broadcast %cst_16 : f32 to vector<32x128xf32>
    %33 = arith.select %17, %31, %32 : vector<32x128xi1>, vector<32x128xf32>
    %cst_17 = arith.constant 0.000000e+00 : f32
    %34 = vector.broadcast %cst_17 : f32 to vector<1x128xf32>
    %35 = arith.maximumf %8, %34 : vector<1x128xf32>
    %36 = math.absf %8 : vector<1x128xf32>
    %cst_18 = arith.constant 0.000000e+00 : f32
    %37 = vector.broadcast %cst_18 : f32 to vector<1x128xf32>
    %38 = arith.subf %37, %36 : vector<1x128xf32>
    %39 = math.exp %38 : vector<1x128xf32>
    %40 = math.log1p %39 : vector<1x128xf32>
    %41 = arith.addf %35, %40 : vector<1x128xf32>
    %cst_19 = arith.constant 5.000000e-02 : f32
    %42 = vector.broadcast %cst_19 : f32 to vector<1x128xf32>
    %43 = arith.mulf %42, %41 : vector<1x128xf32>
    %44 = arith.mulf %43, %10 : vector<1x128xf32>
    %cst_20 = arith.constant 0.000000e+00 : f32
    %45 = vector.broadcast %cst_20 : f32 to vector<1x128xf32>
    %46 = arith.select %20, %44, %45 : vector<1x128xi1>, vector<1x128xf32>
    %47 = arith.addf %5, %33 : vector<32x128xf32>
    %48 = arith.addf %7, %46 : vector<1x128xf32>
    %cst_21 = arith.constant 0.000000e+00 : f32
    %49 = vector.broadcast %cst_21 : f32 to vector<96x128xf32>
    %50 = tpu.concatenate %47, %49 in 0 : vector<32x128xf32>, vector<96x128xf32> -> vector<128x128xf32>
    %cst_22 = arith.constant dense<0.000000e+00> : vector<8x128xf32>
    %51 = tpu.matmul %0, %50, %cst_22 {dimension_numbers = #tpu.dot_dimension_numbers<[1], [0], [0], [1], [0, 0, 1, 1], [], []>} : vector<8x128xf32>, vector<128x128xf32>, vector<8x128xf32> -> vector<8x128xf32>
    %52 = vector.broadcast %48 : vector<1x128xf32> to vector<8x128xf32>
    %53 = arith.addf %51, %52 : vector<8x128xf32>
    %cst_23 = arith.constant 0.000000e+00 : f32
    %54 = vector.broadcast %cst_23 : f32 to vector<8x128xf32>
    %55 = arith.maximumf %53, %54 : vector<8x128xf32>
    %cst_24 = arith.constant 0.000000e+00 : f32
    %56 = vector.broadcast %cst_24 : f32 to vector<32x128xf32>
    %57 = arith.subf %56, %6 : vector<32x128xf32>
    %58 = math.exp %57 : vector<32x128xf32>
    %59 = arith.mulf %33, %58 : vector<32x128xf32>
    %cst_25 = arith.constant 0.000000e+00 : f32
    %60 = vector.broadcast %cst_25 : f32 to vector<1x128xf32>
    %61 = arith.subf %60, %8 : vector<1x128xf32>
    %62 = math.exp %61 : vector<1x128xf32>
    %63 = arith.mulf %46, %62 : vector<1x128xf32>
    %cst_26 = arith.constant -0.918938517 : f32
    %64 = vector.broadcast %cst_26 : f32 to vector<32x128xf32>
    %65 = arith.subf %64, %6 : vector<32x128xf32>
    %cst_27 = arith.constant 5.000000e-01 : f32
    %66 = vector.broadcast %cst_27 : f32 to vector<32x128xf32>
    %67 = arith.mulf %66, %59 : vector<32x128xf32>
    %68 = arith.mulf %67, %59 : vector<32x128xf32>
    %69 = arith.subf %65, %68 : vector<32x128xf32>
    %cst_28 = arith.constant 0.000000e+00 : f32
    %70 = vector.broadcast %cst_28 : f32 to vector<32x128xf32>
    %71 = arith.select %17, %69, %70 : vector<32x128xi1>, vector<32x128xf32>
    %cst_29 = arith.constant -0.918938517 : f32
    %72 = vector.broadcast %cst_29 : f32 to vector<1x128xf32>
    %73 = arith.subf %72, %8 : vector<1x128xf32>
    %cst_30 = arith.constant 5.000000e-01 : f32
    %74 = vector.broadcast %cst_30 : f32 to vector<1x128xf32>
    %75 = arith.mulf %74, %63 : vector<1x128xf32>
    %76 = arith.mulf %75, %63 : vector<1x128xf32>
    %77 = arith.subf %73, %76 : vector<1x128xf32>
    %cst_31 = arith.constant 0.000000e+00 : f32
    %78 = vector.broadcast %cst_31 : f32 to vector<1x128xf32>
    %79 = arith.select %20, %77, %78 : vector<1x128xi1>, vector<1x128xf32>
    %80 = vector.extract_strided_slice %71 {offsets = [0, 0], sizes = [8, 128], strides = [1, 1]} : vector<32x128xf32> to vector<8x128xf32>
    %81 = vector.extract_strided_slice %71 {offsets = [8, 0], sizes = [8, 128], strides = [1, 1]} : vector<32x128xf32> to vector<8x128xf32>
    %82 = arith.addf %80, %81 : vector<8x128xf32>
    %83 = vector.extract_strided_slice %71 {offsets = [16, 0], sizes = [8, 128], strides = [1, 1]} : vector<32x128xf32> to vector<8x128xf32>
    %84 = arith.addf %82, %83 : vector<8x128xf32>
    %85 = vector.extract_strided_slice %71 {offsets = [24, 0], sizes = [8, 128], strides = [1, 1]} : vector<32x128xf32> to vector<8x128xf32>
    %86 = arith.addf %84, %85 : vector<8x128xf32>
    %87 = arith.addf %1, %86 : vector<8x128xf32>
    %88 = arith.addf %2, %79 : vector<1x128xf32>
    %89 = arith.mulf %47, %47 : vector<32x128xf32>
    %cst_32 = arith.constant 2.000000e+02 : f32
    %90 = vector.broadcast %cst_32 : f32 to vector<32x128xf32>
    %91 = arith.mulf %89, %90 : vector<32x128xf32>
    %cst_33 = arith.constant 2.07679367 : f32
    %92 = vector.broadcast %cst_33 : f32 to vector<32x128xf32>
    %93 = arith.subf %92, %91 : vector<32x128xf32>
    %cst_34 = arith.constant 0.000000e+00 : f32
    %94 = vector.broadcast %cst_34 : f32 to vector<32x128xf32>
    %95 = arith.select %17, %93, %94 : vector<32x128xi1>, vector<32x128xf32>
    %96 = arith.mulf %48, %48 : vector<1x128xf32>
    %cst_35 = arith.constant 2.000000e+02 : f32
    %97 = vector.broadcast %cst_35 : f32 to vector<1x128xf32>
    %98 = arith.mulf %96, %97 : vector<1x128xf32>
    %cst_36 = arith.constant 2.07679367 : f32
    %99 = vector.broadcast %cst_36 : f32 to vector<1x128xf32>
    %100 = arith.subf %99, %98 : vector<1x128xf32>
    %cst_37 = arith.constant 0.000000e+00 : f32
    %101 = vector.broadcast %cst_37 : f32 to vector<1x128xf32>
    %102 = arith.select %20, %100, %101 : vector<1x128xi1>, vector<1x128xf32>
    %103 = vector.extract_strided_slice %95 {offsets = [0, 0], sizes = [8, 128], strides = [1, 1]} : vector<32x128xf32> to vector<8x128xf32>
    %104 = vector.extract_strided_slice %95 {offsets = [8, 0], sizes = [8, 128], strides = [1, 1]} : vector<32x128xf32> to vector<8x128xf32>
    %105 = arith.addf %103, %104 : vector<8x128xf32>
    %106 = vector.extract_strided_slice %95 {offsets = [16, 0], sizes = [8, 128], strides = [1, 1]} : vector<32x128xf32> to vector<8x128xf32>
    %107 = arith.addf %105, %106 : vector<8x128xf32>
    %108 = vector.extract_strided_slice %95 {offsets = [24, 0], sizes = [8, 128], strides = [1, 1]} : vector<32x128xf32> to vector<8x128xf32>
    %109 = arith.addf %107, %108 : vector<8x128xf32>
    %cst_38 = arith.constant 1.000000e+00 : f32
    %110 = vector.broadcast %cst_38 : f32 to vector<8x128xf32>
    %111 = arith.mulf %110, %109 : vector<8x128xf32>
    %112 = arith.addf %3, %111 : vector<8x128xf32>
    %cst_39 = arith.constant 1.000000e+00 : f32
    %113 = vector.broadcast %cst_39 : f32 to vector<1x128xf32>
    %114 = arith.mulf %113, %102 : vector<1x128xf32>
    %115 = arith.addf %4, %114 : vector<1x128xf32>
    %c168 = arith.constant 168 : index
    %c0_40 = arith.constant 0 : index
    %116 = vector.load %arg1[%c168, %c0_40] : memref<568x128xf32, #tpu.memory_space<vmem>>, vector<64x128xf32>
    %c296 = arith.constant 296 : index
    %c0_41 = arith.constant 0 : index
    %117 = vector.load %arg1[%c296, %c0_41] : memref<568x128xf32, #tpu.memory_space<vmem>>, vector<64x128xf32>
    %c360 = arith.constant 360 : index
    %c0_42 = arith.constant 0 : index
    %118 = vector.load %arg1[%c360, %c0_42] : memref<568x128xf32, #tpu.memory_space<vmem>>, vector<1x128xf32>
    %c361 = arith.constant 361 : index
    %c0_43 = arith.constant 0 : index
    %119 = vector.load %arg1[%c361, %c0_43] : memref<568x128xf32, #tpu.memory_space<vmem>>, vector<1x128xf32>
    %c40 = arith.constant 40 : index
    %c0_44 = arith.constant 0 : index
    %120 = vector.load %arg2[%c40, %c0_44] : memref<184x128xf32, #tpu.memory_space<vmem>>, vector<64x128xf32>
    %c104 = arith.constant 104 : index
    %c0_45 = arith.constant 0 : index
    %121 = vector.load %arg2[%c104, %c0_45] : memref<184x128xf32, #tpu.memory_space<vmem>>, vector<1x128xf32>
    %122 = tpu.iota {dimensions = array<i32: 0>} : vector<64x128xi32>
    %123 = tpu.iota {dimensions = array<i32: 1>} : vector<64x128xi32>
    %c64_i32_46 = arith.constant 64 : i32
    %124 = vector.broadcast %c64_i32_46 : i32 to vector<64x128xi32>
    %125 = arith.cmpi slt, %122, %124 : vector<64x128xi32>
    %c64_i32_47 = arith.constant 64 : i32
    %126 = vector.broadcast %c64_i32_47 : i32 to vector<64x128xi32>
    %127 = arith.cmpi slt, %123, %126 : vector<64x128xi32>
    %128 = arith.andi %125, %127 : vector<64x128xi1>
    %129 = tpu.iota {dimensions = array<i32: 1>} : vector<1x128xi32>
    %c64_i32_48 = arith.constant 64 : i32
    %130 = vector.broadcast %c64_i32_48 : i32 to vector<1x128xi32>
    %131 = arith.cmpi slt, %129, %130 : vector<1x128xi32>
    %cst_49 = arith.constant 0.000000e+00 : f32
    %132 = vector.broadcast %cst_49 : f32 to vector<64x128xf32>
    %133 = arith.maximumf %117, %132 : vector<64x128xf32>
    %134 = math.absf %117 : vector<64x128xf32>
    %cst_50 = arith.constant 0.000000e+00 : f32
    %135 = vector.broadcast %cst_50 : f32 to vector<64x128xf32>
    %136 = arith.subf %135, %134 : vector<64x128xf32>
    %137 = math.exp %136 : vector<64x128xf32>
    %138 = math.log1p %137 : vector<64x128xf32>
    %139 = arith.addf %133, %138 : vector<64x128xf32>
    %cst_51 = arith.constant 5.000000e-02 : f32
    %140 = vector.broadcast %cst_51 : f32 to vector<64x128xf32>
    %141 = arith.mulf %140, %139 : vector<64x128xf32>
    %142 = arith.mulf %141, %120 : vector<64x128xf32>
    %cst_52 = arith.constant 0.000000e+00 : f32
    %143 = vector.broadcast %cst_52 : f32 to vector<64x128xf32>
    %144 = arith.select %128, %142, %143 : vector<64x128xi1>, vector<64x128xf32>
    %cst_53 = arith.constant 0.000000e+00 : f32
    %145 = vector.broadcast %cst_53 : f32 to vector<1x128xf32>
    %146 = arith.maximumf %119, %145 : vector<1x128xf32>
    %147 = math.absf %119 : vector<1x128xf32>
    %cst_54 = arith.constant 0.000000e+00 : f32
    %148 = vector.broadcast %cst_54 : f32 to vector<1x128xf32>
    %149 = arith.subf %148, %147 : vector<1x128xf32>
    %150 = math.exp %149 : vector<1x128xf32>
    %151 = math.log1p %150 : vector<1x128xf32>
    %152 = arith.addf %146, %151 : vector<1x128xf32>
    %cst_55 = arith.constant 5.000000e-02 : f32
    %153 = vector.broadcast %cst_55 : f32 to vector<1x128xf32>
    %154 = arith.mulf %153, %152 : vector<1x128xf32>
    %155 = arith.mulf %154, %121 : vector<1x128xf32>
    %cst_56 = arith.constant 0.000000e+00 : f32
    %156 = vector.broadcast %cst_56 : f32 to vector<1x128xf32>
    %157 = arith.select %131, %155, %156 : vector<1x128xi1>, vector<1x128xf32>
    %158 = arith.addf %116, %144 : vector<64x128xf32>
    %159 = arith.addf %118, %157 : vector<1x128xf32>
    %cst_57 = arith.constant 0.000000e+00 : f32
    %160 = vector.broadcast %cst_57 : f32 to vector<64x128xf32>
    %161 = tpu.concatenate %158, %160 in 0 : vector<64x128xf32>, vector<64x128xf32> -> vector<128x128xf32>
    %cst_58 = arith.constant dense<0.000000e+00> : vector<8x128xf32>
    %162 = tpu.matmul %55, %161, %cst_58 {dimension_numbers = #tpu.dot_dimension_numbers<[1], [0], [0], [1], [0, 0, 1, 1], [], []>} : vector<8x128xf32>, vector<128x128xf32>, vector<8x128xf32> -> vector<8x128xf32>
    %163 = vector.broadcast %159 : vector<1x128xf32> to vector<8x128xf32>
    %164 = arith.addf %162, %163 : vector<8x128xf32>
    %cst_59 = arith.constant 0.000000e+00 : f32
    %165 = vector.broadcast %cst_59 : f32 to vector<8x128xf32>
    %166 = arith.maximumf %164, %165 : vector<8x128xf32>
    %cst_60 = arith.constant 0.000000e+00 : f32
    %167 = vector.broadcast %cst_60 : f32 to vector<64x128xf32>
    %168 = arith.subf %167, %117 : vector<64x128xf32>
    %169 = math.exp %168 : vector<64x128xf32>
    %170 = arith.mulf %144, %169 : vector<64x128xf32>
    %cst_61 = arith.constant 0.000000e+00 : f32
    %171 = vector.broadcast %cst_61 : f32 to vector<1x128xf32>
    %172 = arith.subf %171, %119 : vector<1x128xf32>
    %173 = math.exp %172 : vector<1x128xf32>
    %174 = arith.mulf %157, %173 : vector<1x128xf32>
    %cst_62 = arith.constant -0.918938517 : f32
    %175 = vector.broadcast %cst_62 : f32 to vector<64x128xf32>
    %176 = arith.subf %175, %117 : vector<64x128xf32>
    %cst_63 = arith.constant 5.000000e-01 : f32
    %177 = vector.broadcast %cst_63 : f32 to vector<64x128xf32>
    %178 = arith.mulf %177, %170 : vector<64x128xf32>
    %179 = arith.mulf %178, %170 : vector<64x128xf32>
    %180 = arith.subf %176, %179 : vector<64x128xf32>
    %cst_64 = arith.constant 0.000000e+00 : f32
    %181 = vector.broadcast %cst_64 : f32 to vector<64x128xf32>
    %182 = arith.select %128, %180, %181 : vector<64x128xi1>, vector<64x128xf32>
    %cst_65 = arith.constant -0.918938517 : f32
    %183 = vector.broadcast %cst_65 : f32 to vector<1x128xf32>
    %184 = arith.subf %183, %119 : vector<1x128xf32>
    %cst_66 = arith.constant 5.000000e-01 : f32
    %185 = vector.broadcast %cst_66 : f32 to vector<1x128xf32>
    %186 = arith.mulf %185, %174 : vector<1x128xf32>
    %187 = arith.mulf %186, %174 : vector<1x128xf32>
    %188 = arith.subf %184, %187 : vector<1x128xf32>
    %cst_67 = arith.constant 0.000000e+00 : f32
    %189 = vector.broadcast %cst_67 : f32 to vector<1x128xf32>
    %190 = arith.select %131, %188, %189 : vector<1x128xi1>, vector<1x128xf32>
    %191 = vector.extract_strided_slice %182 {offsets = [0, 0], sizes = [8, 128], strides = [1, 1]} : vector<64x128xf32> to vector<8x128xf32>
    %192 = vector.extract_strided_slice %182 {offsets = [8, 0], sizes = [8, 128], strides = [1, 1]} : vector<64x128xf32> to vector<8x128xf32>
    %193 = arith.addf %191, %192 : vector<8x128xf32>
    %194 = vector.extract_strided_slice %182 {offsets = [16, 0], sizes = [8, 128], strides = [1, 1]} : vector<64x128xf32> to vector<8x128xf32>
    %195 = arith.addf %193, %194 : vector<8x128xf32>
    %196 = vector.extract_strided_slice %182 {offsets = [24, 0], sizes = [8, 128], strides = [1, 1]} : vector<64x128xf32> to vector<8x128xf32>
    %197 = arith.addf %195, %196 : vector<8x128xf32>
    %198 = vector.extract_strided_slice %182 {offsets = [32, 0], sizes = [8, 128], strides = [1, 1]} : vector<64x128xf32> to vector<8x128xf32>
    %199 = arith.addf %197, %198 : vector<8x128xf32>
    %200 = vector.extract_strided_slice %182 {offsets = [40, 0], sizes = [8, 128], strides = [1, 1]} : vector<64x128xf32> to vector<8x128xf32>
    %201 = arith.addf %199, %200 : vector<8x128xf32>
    %202 = vector.extract_strided_slice %182 {offsets = [48, 0], sizes = [8, 128], strides = [1, 1]} : vector<64x128xf32> to vector<8x128xf32>
    %203 = arith.addf %201, %202 : vector<8x128xf32>
    %204 = vector.extract_strided_slice %182 {offsets = [56, 0], sizes = [8, 128], strides = [1, 1]} : vector<64x128xf32> to vector<8x128xf32>
    %205 = arith.addf %203, %204 : vector<8x128xf32>
    %206 = arith.addf %87, %205 : vector<8x128xf32>
    %207 = arith.addf %88, %190 : vector<1x128xf32>
    %208 = arith.mulf %158, %158 : vector<64x128xf32>
    %cst_68 = arith.constant 2.000000e+02 : f32
    %209 = vector.broadcast %cst_68 : f32 to vector<64x128xf32>
    %210 = arith.mulf %208, %209 : vector<64x128xf32>
    %cst_69 = arith.constant 2.07679367 : f32
    %211 = vector.broadcast %cst_69 : f32 to vector<64x128xf32>
    %212 = arith.subf %211, %210 : vector<64x128xf32>
    %cst_70 = arith.constant 0.000000e+00 : f32
    %213 = vector.broadcast %cst_70 : f32 to vector<64x128xf32>
    %214 = arith.select %128, %212, %213 : vector<64x128xi1>, vector<64x128xf32>
    %215 = arith.mulf %159, %159 : vector<1x128xf32>
    %cst_71 = arith.constant 2.000000e+02 : f32
    %216 = vector.broadcast %cst_71 : f32 to vector<1x128xf32>
    %217 = arith.mulf %215, %216 : vector<1x128xf32>
    %cst_72 = arith.constant 2.07679367 : f32
    %218 = vector.broadcast %cst_72 : f32 to vector<1x128xf32>
    %219 = arith.subf %218, %217 : vector<1x128xf32>
    %cst_73 = arith.constant 0.000000e+00 : f32
    %220 = vector.broadcast %cst_73 : f32 to vector<1x128xf32>
    %221 = arith.select %131, %219, %220 : vector<1x128xi1>, vector<1x128xf32>
    %222 = vector.extract_strided_slice %214 {offsets = [0, 0], sizes = [8, 128], strides = [1, 1]} : vector<64x128xf32> to vector<8x128xf32>
    %223 = vector.extract_strided_slice %214 {offsets = [8, 0], sizes = [8, 128], strides = [1, 1]} : vector<64x128xf32> to vector<8x128xf32>
    %224 = arith.addf %222, %223 : vector<8x128xf32>
    %225 = vector.extract_strided_slice %214 {offsets = [16, 0], sizes = [8, 128], strides = [1, 1]} : vector<64x128xf32> to vector<8x128xf32>
    %226 = arith.addf %224, %225 : vector<8x128xf32>
    %227 = vector.extract_strided_slice %214 {offsets = [24, 0], sizes = [8, 128], strides = [1, 1]} : vector<64x128xf32> to vector<8x128xf32>
    %228 = arith.addf %226, %227 : vector<8x128xf32>
    %229 = vector.extract_strided_slice %214 {offsets = [32, 0], sizes = [8, 128], strides = [1, 1]} : vector<64x128xf32> to vector<8x128xf32>
    %230 = arith.addf %228, %229 : vector<8x128xf32>
    %231 = vector.extract_strided_slice %214 {offsets = [40, 0], sizes = [8, 128], strides = [1, 1]} : vector<64x128xf32> to vector<8x128xf32>
    %232 = arith.addf %230, %231 : vector<8x128xf32>
    %233 = vector.extract_strided_slice %214 {offsets = [48, 0], sizes = [8, 128], strides = [1, 1]} : vector<64x128xf32> to vector<8x128xf32>
    %234 = arith.addf %232, %233 : vector<8x128xf32>
    %235 = vector.extract_strided_slice %214 {offsets = [56, 0], sizes = [8, 128], strides = [1, 1]} : vector<64x128xf32> to vector<8x128xf32>
    %236 = arith.addf %234, %235 : vector<8x128xf32>
    %cst_74 = arith.constant 2.000000e+00 : f32
    %237 = vector.broadcast %cst_74 : f32 to vector<8x128xf32>
    %238 = arith.mulf %237, %236 : vector<8x128xf32>
    %239 = arith.addf %112, %238 : vector<8x128xf32>
    %cst_75 = arith.constant 2.000000e+00 : f32
    %240 = vector.broadcast %cst_75 : f32 to vector<1x128xf32>
    %241 = arith.mulf %240, %221 : vector<1x128xf32>
    %242 = arith.addf %115, %241 : vector<1x128xf32>
    %c368 = arith.constant 368 : index
    %c0_76 = arith.constant 0 : index
    %243 = vector.load %arg1[%c368, %c0_76] : memref<568x128xf32, #tpu.memory_space<vmem>>, vector<64x128xf32>
    %c496 = arith.constant 496 : index
    %c0_77 = arith.constant 0 : index
    %244 = vector.load %arg1[%c496, %c0_77] : memref<568x128xf32, #tpu.memory_space<vmem>>, vector<64x128xf32>
    %c560 = arith.constant 560 : index
    %c0_78 = arith.constant 0 : index
    %245 = vector.load %arg1[%c560, %c0_78] : memref<568x128xf32, #tpu.memory_space<vmem>>, vector<1x128xf32>
    %c561 = arith.constant 561 : index
    %c0_79 = arith.constant 0 : index
    %246 = vector.load %arg1[%c561, %c0_79] : memref<568x128xf32, #tpu.memory_space<vmem>>, vector<1x128xf32>
    %c112 = arith.constant 112 : index
    %c0_80 = arith.constant 0 : index
    %247 = vector.load %arg2[%c112, %c0_80] : memref<184x128xf32, #tpu.memory_space<vmem>>, vector<64x128xf32>
    %c176 = arith.constant 176 : index
    %c0_81 = arith.constant 0 : index
    %248 = vector.load %arg2[%c176, %c0_81] : memref<184x128xf32, #tpu.memory_space<vmem>>, vector<1x128xf32>
    %249 = tpu.iota {dimensions = array<i32: 0>} : vector<64x128xi32>
    %250 = tpu.iota {dimensions = array<i32: 1>} : vector<64x128xi32>
    %c64_i32_82 = arith.constant 64 : i32
    %251 = vector.broadcast %c64_i32_82 : i32 to vector<64x128xi32>
    %252 = arith.cmpi slt, %249, %251 : vector<64x128xi32>
    %c16_i32 = arith.constant 16 : i32
    %253 = vector.broadcast %c16_i32 : i32 to vector<64x128xi32>
    %254 = arith.cmpi slt, %250, %253 : vector<64x128xi32>
    %255 = arith.andi %252, %254 : vector<64x128xi1>
    %256 = tpu.iota {dimensions = array<i32: 1>} : vector<1x128xi32>
    %c16_i32_83 = arith.constant 16 : i32
    %257 = vector.broadcast %c16_i32_83 : i32 to vector<1x128xi32>
    %258 = arith.cmpi slt, %256, %257 : vector<1x128xi32>
    %cst_84 = arith.constant 0.000000e+00 : f32
    %259 = vector.broadcast %cst_84 : f32 to vector<64x128xf32>
    %260 = arith.maximumf %244, %259 : vector<64x128xf32>
    %261 = math.absf %244 : vector<64x128xf32>
    %cst_85 = arith.constant 0.000000e+00 : f32
    %262 = vector.broadcast %cst_85 : f32 to vector<64x128xf32>
    %263 = arith.subf %262, %261 : vector<64x128xf32>
    %264 = math.exp %263 : vector<64x128xf32>
    %265 = math.log1p %264 : vector<64x128xf32>
    %266 = arith.addf %260, %265 : vector<64x128xf32>
    %cst_86 = arith.constant 5.000000e-02 : f32
    %267 = vector.broadcast %cst_86 : f32 to vector<64x128xf32>
    %268 = arith.mulf %267, %266 : vector<64x128xf32>
    %269 = arith.mulf %268, %247 : vector<64x128xf32>
    %cst_87 = arith.constant 0.000000e+00 : f32
    %270 = vector.broadcast %cst_87 : f32 to vector<64x128xf32>
    %271 = arith.select %255, %269, %270 : vector<64x128xi1>, vector<64x128xf32>
    %cst_88 = arith.constant 0.000000e+00 : f32
    %272 = vector.broadcast %cst_88 : f32 to vector<1x128xf32>
    %273 = arith.maximumf %246, %272 : vector<1x128xf32>
    %274 = math.absf %246 : vector<1x128xf32>
    %cst_89 = arith.constant 0.000000e+00 : f32
    %275 = vector.broadcast %cst_89 : f32 to vector<1x128xf32>
    %276 = arith.subf %275, %274 : vector<1x128xf32>
    %277 = math.exp %276 : vector<1x128xf32>
    %278 = math.log1p %277 : vector<1x128xf32>
    %279 = arith.addf %273, %278 : vector<1x128xf32>
    %cst_90 = arith.constant 5.000000e-02 : f32
    %280 = vector.broadcast %cst_90 : f32 to vector<1x128xf32>
    %281 = arith.mulf %280, %279 : vector<1x128xf32>
    %282 = arith.mulf %281, %248 : vector<1x128xf32>
    %cst_91 = arith.constant 0.000000e+00 : f32
    %283 = vector.broadcast %cst_91 : f32 to vector<1x128xf32>
    %284 = arith.select %258, %282, %283 : vector<1x128xi1>, vector<1x128xf32>
    %285 = arith.addf %243, %271 : vector<64x128xf32>
    %286 = arith.addf %245, %284 : vector<1x128xf32>
    %cst_92 = arith.constant 0.000000e+00 : f32
    %287 = vector.broadcast %cst_92 : f32 to vector<64x128xf32>
    %288 = tpu.concatenate %285, %287 in 0 : vector<64x128xf32>, vector<64x128xf32> -> vector<128x128xf32>
    %cst_93 = arith.constant dense<0.000000e+00> : vector<8x128xf32>
    %289 = tpu.matmul %166, %288, %cst_93 {dimension_numbers = #tpu.dot_dimension_numbers<[1], [0], [0], [1], [0, 0, 1, 1], [], []>} : vector<8x128xf32>, vector<128x128xf32>, vector<8x128xf32> -> vector<8x128xf32>
    %290 = vector.broadcast %286 : vector<1x128xf32> to vector<8x128xf32>
    %291 = arith.addf %289, %290 : vector<8x128xf32>
    %cst_94 = arith.constant 0.000000e+00 : f32
    %292 = vector.broadcast %cst_94 : f32 to vector<64x128xf32>
    %293 = arith.subf %292, %244 : vector<64x128xf32>
    %294 = math.exp %293 : vector<64x128xf32>
    %295 = arith.mulf %271, %294 : vector<64x128xf32>
    %cst_95 = arith.constant 0.000000e+00 : f32
    %296 = vector.broadcast %cst_95 : f32 to vector<1x128xf32>
    %297 = arith.subf %296, %246 : vector<1x128xf32>
    %298 = math.exp %297 : vector<1x128xf32>
    %299 = arith.mulf %284, %298 : vector<1x128xf32>
    %cst_96 = arith.constant -0.918938517 : f32
    %300 = vector.broadcast %cst_96 : f32 to vector<64x128xf32>
    %301 = arith.subf %300, %244 : vector<64x128xf32>
    %cst_97 = arith.constant 5.000000e-01 : f32
    %302 = vector.broadcast %cst_97 : f32 to vector<64x128xf32>
    %303 = arith.mulf %302, %295 : vector<64x128xf32>
    %304 = arith.mulf %303, %295 : vector<64x128xf32>
    %305 = arith.subf %301, %304 : vector<64x128xf32>
    %cst_98 = arith.constant 0.000000e+00 : f32
    %306 = vector.broadcast %cst_98 : f32 to vector<64x128xf32>
    %307 = arith.select %255, %305, %306 : vector<64x128xi1>, vector<64x128xf32>
    %cst_99 = arith.constant -0.918938517 : f32
    %308 = vector.broadcast %cst_99 : f32 to vector<1x128xf32>
    %309 = arith.subf %308, %246 : vector<1x128xf32>
    %cst_100 = arith.constant 5.000000e-01 : f32
    %310 = vector.broadcast %cst_100 : f32 to vector<1x128xf32>
    %311 = arith.mulf %310, %299 : vector<1x128xf32>
    %312 = arith.mulf %311, %299 : vector<1x128xf32>
    %313 = arith.subf %309, %312 : vector<1x128xf32>
    %cst_101 = arith.constant 0.000000e+00 : f32
    %314 = vector.broadcast %cst_101 : f32 to vector<1x128xf32>
    %315 = arith.select %258, %313, %314 : vector<1x128xi1>, vector<1x128xf32>
    %316 = vector.extract_strided_slice %307 {offsets = [0, 0], sizes = [8, 128], strides = [1, 1]} : vector<64x128xf32> to vector<8x128xf32>
    %317 = vector.extract_strided_slice %307 {offsets = [8, 0], sizes = [8, 128], strides = [1, 1]} : vector<64x128xf32> to vector<8x128xf32>
    %318 = arith.addf %316, %317 : vector<8x128xf32>
    %319 = vector.extract_strided_slice %307 {offsets = [16, 0], sizes = [8, 128], strides = [1, 1]} : vector<64x128xf32> to vector<8x128xf32>
    %320 = arith.addf %318, %319 : vector<8x128xf32>
    %321 = vector.extract_strided_slice %307 {offsets = [24, 0], sizes = [8, 128], strides = [1, 1]} : vector<64x128xf32> to vector<8x128xf32>
    %322 = arith.addf %320, %321 : vector<8x128xf32>
    %323 = vector.extract_strided_slice %307 {offsets = [32, 0], sizes = [8, 128], strides = [1, 1]} : vector<64x128xf32> to vector<8x128xf32>
    %324 = arith.addf %322, %323 : vector<8x128xf32>
    %325 = vector.extract_strided_slice %307 {offsets = [40, 0], sizes = [8, 128], strides = [1, 1]} : vector<64x128xf32> to vector<8x128xf32>
    %326 = arith.addf %324, %325 : vector<8x128xf32>
    %327 = vector.extract_strided_slice %307 {offsets = [48, 0], sizes = [8, 128], strides = [1, 1]} : vector<64x128xf32> to vector<8x128xf32>
    %328 = arith.addf %326, %327 : vector<8x128xf32>
    %329 = vector.extract_strided_slice %307 {offsets = [56, 0], sizes = [8, 128], strides = [1, 1]} : vector<64x128xf32> to vector<8x128xf32>
    %330 = arith.addf %328, %329 : vector<8x128xf32>
    %331 = arith.addf %206, %330 : vector<8x128xf32>
    %332 = arith.addf %207, %315 : vector<1x128xf32>
    %c0_102 = arith.constant 0 : index
    %c0_103 = arith.constant 0 : index
    %333 = vector.load %arg3[%c0_102, %c0_103] : memref<8x128xf32, #tpu.memory_space<vmem>>, vector<8x128xf32>
    tpu.vector_store %arg3[%c0_102, %c0_103], %291 {strides = array<i32>} : memref<8x128xf32, #tpu.memory_space<vmem>>, vector<8x128xf32>,
    %334 = vector.shape_cast %239 : vector<8x128xf32> to vector<1x8x128xf32>
    %cst_104 = arith.constant dense<0.000000e+00> : vector<1xf32>
    %335 = vector.multi_reduction <add>, %334, %cst_104 [1, 2] : vector<1x8x128xf32> to vector<1xf32>
    %336 = vector.shape_cast %335 : vector<1xf32> to vector<1x1x1xf32>
    %337 = vector.extract %336[0, 0, 0] : f32 from vector<1x1x1xf32>
    %338 = vector.shape_cast %242 : vector<1x128xf32> to vector<1x1x128xf32>
    %cst_105 = arith.constant dense<0.000000e+00> : vector<1xf32>
    %339 = vector.multi_reduction <add>, %338, %cst_105 [1, 2] : vector<1x1x128xf32> to vector<1xf32>
    %340 = vector.shape_cast %339 : vector<1xf32> to vector<1x1x1xf32>
    %341 = vector.extract %340[0, 0, 0] : f32 from vector<1x1x1xf32>
    %342 = arith.addf %337, %341 : f32
    %c0_106 = arith.constant 0 : index
    %343 = memref.load %arg4[%c0_106] : memref<2xf32, #tpu.memory_space<smem>>
    memref.store %342, %arg4[%c0_106] : memref<2xf32, #tpu.memory_space<smem>>
    %344 = vector.shape_cast %331 : vector<8x128xf32> to vector<1x8x128xf32>
    %cst_107 = arith.constant dense<0.000000e+00> : vector<1xf32>
    %345 = vector.multi_reduction <add>, %344, %cst_107 [1, 2] : vector<1x8x128xf32> to vector<1xf32>
    %346 = vector.shape_cast %345 : vector<1xf32> to vector<1x1x1xf32>
    %347 = vector.extract %346[0, 0, 0] : f32 from vector<1x1x1xf32>
    %348 = vector.shape_cast %332 : vector<1x128xf32> to vector<1x1x128xf32>
    %cst_108 = arith.constant dense<0.000000e+00> : vector<1xf32>
    %349 = vector.multi_reduction <add>, %348, %cst_108 [1, 2] : vector<1x1x128xf32> to vector<1xf32>
    %350 = vector.shape_cast %349 : vector<1xf32> to vector<1x1x1xf32>
    %351 = vector.extract %350[0, 0, 0] : f32 from vector<1x1x1xf32>
    %352 = arith.addf %347, %351 : f32
    %c1 = arith.constant 1 : index
    %353 = memref.load %arg4[%c1] : memref<2xf32, #tpu.memory_space<smem>>
    memref.store %352, %arg4[%c1] : memref<2xf32, #tpu.memory_space<smem>>
    return
  }
}

</mosaic_0001>

<bundles_post_ra>
// kernel: tpu_custom_call.1
= control target key start
LH: loop header
LB: loop body
LE: loop exit
PB: predicated region body
PF: predicated region fallthrough
CT: control target
= control target key end

     0   :  { %10 = vsyncpa [#allocation3], 0  ;;  %s1953_s0 = inlined_call_operand.hbm [shape: f32[8,128], index: 0, kind: input, shape index: {}]   ;;  %s1954_s1 = inlined_call_operand.hbm [shape: f32[568,128], index: 1, kind: input, shape index: {}]   ;;  %s1955_s2 = inlined_call_operand.hbm [shape: f32[184,128], index: 2, kind: input, shape index: {}]   ;;  %s1956_s3 = inlined_call_operand.hbm [shape: f32[8,128], index: 3, kind: output, shape index: {0}]   ;;  %s1957_s4 = inlined_call_operand.hbm [shape: f32[2], index: 4, kind: output, shape index: {1}]  }
   0x1   :  { %11 = vsyncpa [#allocation7], 0 }
   0x2   :  { %12 = vsyncpa [#allocation4], 0  ;;  %s29_s17 = sshll.u32 %s1954_s1, 4  ;;  %s30_s17 = int_to_ptr.hbm [resolvable:$true] %s29_s17 }
   0x3   :  { %13 = vsyncpa [#allocation5], 0  ;;  %s1331_s18 = smov [#allocation6]   ;;  %s19_s22 = sshll.u32 %s1953_s0, 4  ;;  %s20_s22 = int_to_ptr.hbm [resolvable:$true] %s19_s22 }
   0x4   :  { %s31_s19 = sshll.u32 %s1331_s18, 4  ;;  %s1332_s23 = smov 128   ;;  %s32_s19 = int_to_ptr.vmem [resolvable:$true] %s31_s19 }
   0x5   :  { %s1333_s24 = smov 8   ;;  %s1334_s25 = smov [#allocation2]  }
   0x6   :  { %37 = dma.hbm_to_vmem [thread:$0]  %s30_s17, 9088, %s32_s19, [#allocation7], %s1332_s23, %s1332_s23, %s1333_s24  }
   0x7   :  { %s21_s26 = sshll.u32 %s1334_s25, 4  ;;  %s42_s29 = sshll.u32 %s1955_s2, 4  ;;  %s22_s26 = int_to_ptr.vmem [resolvable:$true] %s21_s26  ;;  %s43_s29 = int_to_ptr.hbm [resolvable:$true] %s42_s29 }
   0x8   :  { %24 = dma.hbm_to_vmem [thread:$0]  %s20_s22, 128, %s22_s26, [#allocation3]  }
   0x9   :  { %s1335_s1 = smov [#allocation8]  }
   0xa   :  { %s44_s30 = sshll.u32 %s1335_s1, 4  ;;  %s45_s30 = int_to_ptr.vmem [resolvable:$true] %s44_s30 }
   0xb   :  { %50 = dma.hbm_to_vmem [thread:$0]  %s43_s29, 2944, %s45_s30, [#allocation7], %s1332_s23, %s1332_s23, %s1333_s24  }
   0xc   :  { %1323 = dma.done.wait [#allocation3], 128  }
   0xd   :  { %1324 = vsyncadd [#allocation3], 4294967168 }
   0xe   :  { %1325 = dma.done.wait [#allocation7], 12032  }
   0xf   :  { %1326 = vsyncadd [#allocation7], 4294955264  ;;  %v1372_v0 = vld [vmem:[#allocation6 + $0x98] sm:$0xff]  ;;  %v1375_v2 = vld [vmem:[#allocation6 + $0x90] sm:$0xff]  ;;  %v84_v17 = vlaneseq  ;;  %s1336_s6 = smov [#allocation9]   ;;  %s1035_s10 = sshll.u32 %s1956_s3, 4  ;;  %s1036_s10 = int_to_ptr.hbm [resolvable:$true] %s1035_s10 }
  0x10   :  { %v102_v1 = vand.u32 2147483647, %v1372_v0  ;;  %v1377_v3 = vld [vmem:[#allocation6 + $0x88] sm:$0xff]  ;;  %v101_v4 = vand.u32 2147483647, %v1375_v2  ;;  %v1381_v7 = vld [vmem:[#allocation6 + $0x80] sm:$0xff] }
  0x11   :  { %v100_v6 = vand.u32 2147483647, %v1377_v3  ;;  %v99_v9 = vand.u32 2147483647, %v1381_v7  ;;  %v214_v23 = vsub.f32 0.0, %v1375_v2  ;;  %v1385_v29 = vand.u32 127, %v84_v17 }
  0x12   :  { %v106_v5 = vsub.f32 0.0, %v102_v1  ;;  %v105_v8 = vsub.f32 0.0, %v101_v4  ;;  %v98_v30 = vmax.f32 %v1372_v0, 0.0  ;;  %v97_v32 = vmax.f32 %v1375_v2, 0.0  ;;  %v1390_v35 = vld [vmem:[#allocation6 + $0x160] sm:$0xff]  ;;  %v77_v4 = vld [vmem:[#allocation8 + $0x18] sm:$0xff] }
  0x13   :  { %v104_v11 = vsub.f32 0.0, %v100_v6  ;;  %v103_v13 = vsub.f32 0.0, %v99_v9  ;;  %v96_v34 = vmax.f32 %v1377_v3, 0.0  ;;  %v220_v41 = vmul.f32 1.442695, %v214_v23  ;;  %v1419_v17 = vld [vmem:[#allocation6 + $0x158] sm:$0xff] }
  0x14   :  { %v113_v10 = vmul.f32 1.442695, %v106_v5  ;;  %v111_v12 = vmul.f32 1.442695, %v105_v8  ;;  %v213_v43 = vsub.f32 0.0, %v1377_v3  ;;  %v212_v46 = vsub.f32 0.0, %v1381_v7 }
  0x15   :  { %v109_v14 = vmul.f32 1.442695, %v104_v11  ;;  %v107_v15 = vmul.f32 1.442695, %v103_v13  ;;  %v349_v47 = vand.u32 2147483647, %v1390_v35 }
  0x16   :  { %1076 = vpow2.f32 %v113_v10  ;;  %v95_v55 = vmax.f32 %v1381_v7, 0.0  ;;  %v218_v61 = vmul.f32 1.442695, %v213_v43  ;;  %v216_v9 = vmul.f32 1.442695, %v212_v46  ;;  %v63_v60 = vld [vmem:[#allocation2] sm:$0xff] }
  0x17   :  { %1078 = vpow2.f32 %v111_v12  ;;  %v357_v56 = vsub.f32 0.0, %v349_v47  ;;  %vm90_vm4 = vcmp.lt.s32.totalorder %v1385_v29, 64  ;;  %s1033_s7 = sshll.u32 %s1336_s6, 4  ;;  %s1044_s13 = sshll.u32 %s1957_s4, 4  ;;  %s1034_s7 = int_to_ptr.vmem [resolvable:$true] %s1033_s7  ;;  %s1045_s13 = int_to_ptr.hbm [resolvable:$true] %s1044_s13 }
  0x18   :  { %1080 = vpow2.f32 %v109_v14  ;;  %v76_v14 = vld [vmem:[#allocation8 + $0x10] sm:$0xff]  ;;  %s1337_s17 = smov [#allocation10]  }
  0x19   :  { %1082 = vpow2.f32 %v107_v15  ;;  %v372_v1 = vmul.f32 1.442695, %v357_v56 }
  0x1c   :  { %v1077_v16 = vpop.eup %1076 }
  0x1d   :  { %v142_v18 = vadd.f32 1.0, %v1077_v16  ;;  %v145_v19 = vmul.f32 -0.5, %v1077_v16  ;;  %v1079_v20 = vpop.eup %1078  ;;  %v148_v31 = vand.u32 2147483647, %v1077_v16 }
  0x1e   :  { %v1081_v21 = vpop.eup %1080  ;;  %v133_v22 = vadd.f32 1.0, %v1079_v20  ;;  %v136_v25 = vmul.f32 -0.5, %v1079_v20  ;;  %v139_v36 = vand.u32 2147483647, %v1079_v20 }
  0x1f   :  { %1084 = vlog2.f32 %v142_v18  ;;  %v146_v24 = vadd.f32 1.0, %v145_v19  ;;  %v124_v26 = vadd.f32 1.0, %v1081_v21  ;;  %v127_v27 = vmul.f32 -0.5, %v1081_v21  ;;  %v1083_v28 = vpop.eup %1082  ;;  %v67_v18 = vld [vmem:[#allocation6 + $0x18] sm:$0xff] }
  0x20   :  { %1086 = vlog2.f32 %v133_v22  ;;  %v137_v33 = vadd.f32 1.0, %v136_v25  ;;  %v115_v38 = vadd.f32 1.0, %v1083_v28  ;;  %v118_v39 = vmul.f32 -0.5, %v1083_v28 }
  0x21   :  { %1088 = vlog2.f32 %v124_v26  ;;  %v128_v37 = vadd.f32 1.0, %v127_v27  ;;  %v147_v40 = vmul.f32 %v1077_v16, %v146_v24  ;;  %v130_v42 = vand.u32 2147483647, %v1081_v21  ;;  %v66_v27 = vld [vmem:[#allocation6 + $0x10] sm:$0xff] }
  0x22   :  { %vm1393_vm0 = vcmp.lt.f32.partialorder %v148_v31, 0.0004427343  ;;  %1090 = vlog2.f32 %v115_v38  ;;  %v138_v49 = vmul.f32 %v1079_v20, %v137_v33  ;;  %v119_v50 = vadd.f32 1.0, %v118_v39  ;;  %v74_v33 = vld [vmem:[#allocation8] sm:$0xff] }
  0x23   :  { %v121_v51 = vand.u32 2147483647, %v1083_v28  ;;  %vm1399_vm1 = vcmp.lt.f32.partialorder %v139_v36, 0.0004427343  ;;  %v129_v54 = vmul.f32 %v1081_v21, %v128_v37  ;;  %vm1406_vm2 = vcmp.lt.f32.partialorder %v130_v42, 0.0004427343 }
  0x24   :  { %1092 = vpow2.f32 %v220_v41  ;;  %v120_v6 = vmul.f32 %v1083_v28, %v119_v50  ;;  %v75_v21 = vld [vmem:[#allocation8 + $0x8] sm:$0xff]  ;;  %v348_v24 = vand.u32 2147483647, %v1419_v17  ;;  %v65_v41 = vld [vmem:[#allocation6 + $0x8] sm:$0xff] }
  0x25   :  { %v1085_v44 = vpop.eup %1084  ;;  %vm1412_vm3 = vcmp.lt.f32.partialorder %v121_v51, 0.0004427343  ;;  %1094 = vpow2.f32 %v372_v1  ;;  %v232_v1 = vsub.f32 -0.9189385, %v1381_v7 }
  0x26   :  { %v144_v48 = vmul.f32 0.6931472, %v1085_v44  ;;  %v1087_v52 = vpop.eup %1086  ;;  %1096 = vpow2.f32 %v218_v61  ;;  %v356_v42 = vsub.f32 0.0, %v348_v24  ;;  %v64_v44 = vld [vmem:[#allocation6] sm:$0xff] }
  0x27   :  { %v1089_v57 = vpop.eup %1088  ;;  %v135_v59 = vmul.f32 0.6931472, %v1087_v52  ;;  %1098 = vpow2.f32 %v216_v9 }
  0x28   :  { %v150_v58 = vsel %vm1393_vm0, %v147_v40, %v144_v48  ;;  %v126_v63 = vmul.f32 0.6931472, %v1089_v57  ;;  %v1091_v10 = vpop.eup %1090  ;;  %v370_v56 = vmul.f32 1.442695, %v356_v42  ;;  %v233_v57 = vsub.f32 -0.9189385, %v1377_v3 }
  0x29   :  { %v154_v62 = vadd.f32 %v150_v58, %v98_v30  ;;  %v141_v5 = vsel %vm1399_vm1, %v138_v49, %v135_v59  ;;  %v117_v16 = vmul.f32 0.6931472, %v1091_v10  ;;  %v234_v49 = vsub.f32 -0.9189385, %v1375_v2 }
  0x2a   :  { %v153_v12 = vadd.f32 %v141_v5, %v97_v32  ;;  %v132_v13 = vsel %vm1406_vm2, %v129_v54, %v126_v63  ;;  %v1093_v25 = vpop.eup %1092  ;;  %v341_v10 = vmax.f32 %v1390_v35, 0.0 }
  0x2b   :  { %v158_v11 = vmul.f32 0.05, %v154_v62  ;;  %v152_v15 = vadd.f32 %v132_v13, %v96_v34  ;;  %v123_v23 = vsel %vm1412_vm3, %v120_v6, %v117_v16  ;;  %v1095_v34 = vpop.eup %1094  ;;  %v1452_v6 = vld [vmem:[#allocation6 + $0x150] sm:$0xff]  ;;  %vm691_vm3 = vcmp.lt.s32.totalorder %v1385_v29, 16 }
  0x2c   :  { %v157_v20 = vmul.f32 0.05, %v153_v12  ;;  %v151_v30 = vadd.f32 %v123_v23, %v95_v55  ;;  %v1097_v38 = vpop.eup %1096  ;;  %v437_v46 = vadd.f32 1.0, %v1095_v34  ;;  %v440_v47 = vmul.f32 -0.5, %v1095_v34  ;;  %v294_v23 = vld [vmem:[#allocation6 + $0xe0] sm:$0xff] }
  0x2d   :  { %v162_v19 = vmul.f32 %v158_v11, %v77_v4  ;;  %v156_v22 = vmul.f32 0.05, %v152_v15  ;;  %v1099_v48 = vpop.eup %1098  ;;  %v443_v62 = vand.u32 2147483647, %v1095_v34  ;;  %v347_v13 = vand.u32 2147483647, %v1452_v6 }
  0x2e   :  { %v161_v28 = vmul.f32 %v157_v20, %v76_v14  ;;  %v155_v37 = vmul.f32 0.05, %v151_v30  ;;  %1100 = vlog2.f32 %v437_v46  ;;  %v441_v2 = vadd.f32 1.0, %v440_v47 }
  0x2f   :  { %v1426_v26 = vsel %vm90_vm4, %v162_v19, 0.0  ;;  %v160_v32 = vmul.f32 %v156_v22, %v75_v21  ;;  %1102 = vpow2.f32 %v370_v56  ;;  %vm444_vm5 = vcmp.lt.f32.partialorder %v443_v62, 0.0004427343  ;;  %v1474_v56 = vld [vmem:[#allocation6 + $0x140] sm:$0xff] }
  0x30   :  { %v1429_v31 = vadd.f32 %v1426_v26, %v67_v18  ;;  %v165_v36 = vsel %vm90_vm4, %v161_v28, 0.0  ;;  %v159_v45 = vmul.f32 %v155_v37, %v74_v33  ;;  %v442_v5 = vmul.f32 %v1095_v34, %v441_v2  ;;  %v312_v18 = vld [vmem:[#allocation8 + $0x60] sm:$0xff]  ;;  %v1468_v33 = vld [vmem:[#allocation6 + $0x148] sm:$0xff] }
  0x31   :  { %v1434_v39 = vadd.f32 %v165_v36, %v66_v27  ;;  %v226_v40 = vmul.f32 %v1093_v25, %v165_v36  ;;  %v164_v43 = vsel %vm90_vm4, %v160_v32, 0.0  ;;  %v355_v15 = vsub.f32 0.0, %v347_v13 }
  0x32   :  { %203 = vmatpush.msra.mxu0 %v1429_v31  ;;  %v1440_v51 = vadd.f32 %v164_v43, %v65_v41  ;;  %v225_v52 = vmul.f32 %v1097_v38, %v164_v43  ;;  %v163_v53 = vsel %vm90_vm4, %v159_v45, 0.0  ;;  %v533_v25 = vsub.f32 0.0, %v1419_v17 }
  0x33   :  { %v238_v50 = vmul.f32 0.5, %v226_v40  ;;  %v1444_v55 = vadd.f32 %v163_v53, %v64_v44  ;;  %v224_v59 = vmul.f32 %v1099_v48, %v163_v53  ;;  %v368_v22 = vmul.f32 1.442695, %v355_v15 }
  0x34   :  { %204 = vmatpush.msra.mxu0 %v1434_v39  ;;  %v237_v58 = vmul.f32 0.5, %v225_v52  ;;  %v1101_v8 = vpop.eup %1100  ;;  %v547_v34 = vmul.f32 1.442695, %v533_v25  ;;  %v346_v36 = vand.u32 2147483647, %v1468_v33 }
  0x35   :  { %v242_v54 = vmul.f32 %v238_v50, %v226_v40  ;;  %v236_v4 = vmul.f32 0.5, %v224_v59  ;;  %v439_v11 = vmul.f32 0.6931472, %v1101_v8  ;;  %v1103_v16 = vpop.eup %1102  ;;  %v340_v40 = vmax.f32 %v1419_v17, 0.0  ;;  %v311_v50 = vld [vmem:[#allocation8 + $0x58] sm:$0xff] }
  0x36   :  { %205 = vmatpush.msra.mxu0 %v1440_v51  ;;  %v241_v63 = vmul.f32 %v237_v58, %v225_v52  ;;  %v428_v20 = vadd.f32 1.0, %v1103_v16  ;;  %v431_v21 = vmul.f32 -0.5, %v1103_v16  ;;  %v434_v30 = vand.u32 2147483647, %v1103_v16  ;;  %v293_v58 = vld [vmem:[#allocation6 + $0xd8] sm:$0xff] }
  0x37   :  { %v1448_v61 = vsub.f32 %v234_v49, %v242_v54  ;;  %v240_v9 = vmul.f32 %v236_v4, %v224_v59  ;;  %v445_v14 = vsel %vm444_vm5, %v442_v5, %v439_v11  ;;  %v354_v41 = vsub.f32 0.0, %v346_v36 }
  0x38   :  { %206 = vmatpush.msra.mxu0 %v1444_v55  ;;  %v1454_v3 = vsub.f32 %v233_v57, %v241_v63  ;;  %v453_v7 = vadd.f32 %v445_v14, %v341_v10  ;;  %1104 = vlog2.f32 %v428_v20  ;;  %v432_v27 = vadd.f32 1.0, %v431_v21 }
  0x39   :  { %207 = vmatmul.f32.vlgmr.msra.gmra.mxu0 %v63_v60  ;;  %v1457_v12 = vsub.f32 %v232_v1, %v240_v9  ;;  %1106 = vpow2.f32 %v368_v22  ;;  %vm435_vm6 = vcmp.lt.f32.partialorder %v434_v30, 0.0004427343  ;;  %v366_v46 = vmul.f32 1.442695, %v354_v41  ;;  %v310_v22 = vld [vmem:[#allocation8 + $0x50] sm:$0xff] }
  0x3a   :  { %v461_v19 = vmul.f32 0.05, %v453_v7  ;;  %v433_v37 = vmul.f32 %v1103_v16, %v432_v27  ;;  %1108 = vpow2.f32 %v547_v34  ;;  %v532_v49 = vsub.f32 0.0, %v1452_v6  ;;  %v292_v34 = vld [vmem:[#allocation6 + $0xd0] sm:$0xff] }
  0x3b   :  { %v345_v2 = vand.u32 2147483647, %v1474_v56  ;;  %v339_v4 = vmax.f32 %v1452_v6, 0.0  ;;  %v569_v15 = vsub.f32 -0.9189385, %v1419_v17  ;;  %v531_v20 = vsub.f32 0.0, %v1468_v33 }
  0x3c   :  { %v469_v24 = vmul.f32 %v461_v19, %v312_v18  ;;  %v545_v60 = vmul.f32 1.442695, %v532_v49  ;;  %v338_v41 = vmax.f32 %v1468_v33, 0.0 }
  0x3d   :  { %v353_v5 = vsub.f32 0.0, %v345_v2 }
  0x3e   :  { %v1463_v28 = vsel %vm90_vm4, %v469_v24, 0.0  ;;  %v1105_v38 = vpop.eup %1104 }
  0x3f   :  { %v1466_v32 = vadd.f32 %v1463_v28, %v294_v23  ;;  %v1107_v42 = vpop.eup %1106  ;;  %v430_v43 = vmul.f32 0.6931472, %v1105_v38  ;;  %v364_v7 = vmul.f32 1.442695, %v353_v5 }
  0x40   :  { %v419_v44 = vadd.f32 1.0, %v1107_v42  ;;  %v422_v45 = vmul.f32 -0.5, %v1107_v42  ;;  %v425_v54 = vand.u32 2147483647, %v1107_v42  ;;  %v1109_v57 = vpop.eup %1108 }
  0x41   :  { %514 = vmatpush.msra.mxu1 %v1466_v32  ;;  %v436_v47 = vsel %vm435_vm6, %v433_v37, %v430_v43  ;;  %v543_v37 = vmul.f32 1.442695, %v531_v20 }
  0x42   :  { %v452_v48 = vadd.f32 %v436_v47, %v340_v40  ;;  %1110 = vlog2.f32 %v419_v44  ;;  %v423_v52 = vadd.f32 1.0, %v422_v45  ;;  %vm426_vm7 = vcmp.lt.f32.partialorder %v425_v54, 0.0004427343 }
  0x43   :  { %1112 = vpow2.f32 %v366_v46 }
  0x44   :  { %v460_v53 = vmul.f32 0.05, %v452_v48  ;;  %v424_v62 = vmul.f32 %v1107_v42, %v423_v52  ;;  %1114 = vpow2.f32 %v545_v60  ;;  %v568_v48 = vsub.f32 -0.9189385, %v1452_v6 }
  0x46   :  { %v468_v59 = vmul.f32 %v460_v53, %v311_v50  ;;  %v530_v53 = vsub.f32 0.0, %v1474_v56 }
  0x48   :  { %v1111_v63 = vpop.eup %1110  ;;  %v476_v1 = vsel %vm90_vm4, %v468_v59, 0.0  ;;  %v1495_v59 = vld [vmem:[#allocation6 + $0xa1] sm:$0x1]  ;;  %v541_v5 = vmul.f32 1.442695, %v530_v53 }
  0x49   :  { %v1113_v8 = vpop.eup %1112  ;;  %v1480_v9 = vadd.f32 %v476_v1, %v293_v58  ;;  %v557_v10 = vmul.f32 %v1109_v57, %v476_v1  ;;  %v421_v11 = vmul.f32 0.6931472, %v1111_v63  ;;  %v309_v57 = vld [vmem:[#allocation8 + $0x48] sm:$0xff]  ;;  %v291_v1 = vld [vmem:[#allocation6 + $0xc8] sm:$0xff]  ;;  %v168_v6 = vand.u32 2147483647, %v1495_v59 }
  0x4a   :  { %v410_v13 = vadd.f32 1.0, %v1113_v8  ;;  %v413_v14 = vmul.f32 -0.5, %v1113_v8  ;;  %v416_v25 = vand.u32 2147483647, %v1113_v8  ;;  %v1115_v30 = vpop.eup %1114 }
  0x4b   :  { %515 = vmatpush.msra.mxu1 %v1480_v9  ;;  %v577_v16 = vmul.f32 0.5, %v557_v10  ;;  %v427_v18 = vsel %vm426_vm7, %v424_v62, %v421_v11 }
  0x4c   :  { %v451_v19 = vadd.f32 %v427_v18, %v339_v4  ;;  %1116 = vlog2.f32 %v410_v13  ;;  %v414_v23 = vadd.f32 1.0, %v413_v14  ;;  %vm417_vm8 = vcmp.lt.f32.partialorder %v416_v25, 0.0004427343 }
  0x4d   :  { %v585_v21 = vmul.f32 %v577_v16, %v557_v10  ;;  %1118 = vpow2.f32 %v364_v7  ;;  %v337_v13 = vmax.f32 %v1474_v56, 0.0  ;;  %v169_v16 = vsub.f32 0.0, %v168_v6 }
  0x4e   :  { %v459_v24 = vmul.f32 0.05, %v451_v19  ;;  %v415_v38 = vmul.f32 %v1113_v8, %v414_v23  ;;  %1120 = vpow2.f32 %v543_v37  ;;  %v567_v18 = vsub.f32 -0.9189385, %v1468_v33  ;;  %v308_v23 = vld [vmem:[#allocation8 + $0x40] sm:$0xff] }
  0x4f   :  { %v1485_v27 = vsub.f32 %v569_v15, %v585_v21  ;;  %v170_v25 = vmul.f32 1.442695, %v169_v16  ;;  %v215_v33 = vsub.f32 0.0, %v1372_v0 }
  0x50   :  { %v467_v36 = vmul.f32 %v459_v24, %v310_v22 }
  0x52   :  { %v1117_v17 = vpop.eup %1116  ;;  %v475_v40 = vsel %vm90_vm4, %v467_v36, 0.0  ;;  %v290_v36 = vld [vmem:[#allocation6 + $0xc0] sm:$0xff] }
  0x53   :  { %v1119_v42 = vpop.eup %1118  ;;  %v1490_v43 = vadd.f32 %v475_v40, %v292_v34  ;;  %v556_v44 = vmul.f32 %v1115_v30, %v475_v40  ;;  %v412_v45 = vmul.f32 0.6931472, %v1117_v17 }
  0x54   :  { %v401_v46 = vadd.f32 1.0, %v1119_v42  ;;  %v404_v47 = vmul.f32 -0.5, %v1119_v42  ;;  %v407_v2 = vand.u32 2147483647, %v1119_v42  ;;  %v1121_v63 = vpop.eup %1120 }
  0x55   :  { %516 = vmatpush.msra.mxu1 %v1490_v43  ;;  %v576_v49 = vmul.f32 0.5, %v556_v44  ;;  %v418_v50 = vsel %vm417_vm8, %v415_v38, %v412_v45 }
  0x56   :  { %v450_v52 = vadd.f32 %v418_v50, %v338_v41  ;;  %1122 = vlog2.f32 %v401_v46  ;;  %v405_v58 = vadd.f32 1.0, %v404_v47  ;;  %vm408_vm9 = vcmp.lt.f32.partialorder %v407_v2, 0.0004427343  ;;  %v1519_v47 = vld [vmem:[#allocation6 + $0x130] sm:$0xff] }
  0x57   :  { %v584_v54 = vmul.f32 %v576_v49, %v556_v44  ;;  %1124 = vpow2.f32 %v541_v5  ;;  %v566_v41 = vsub.f32 -0.9189385, %v1474_v56  ;;  %v1516_v44 = vld [vmem:[#allocation6 + $0x138] sm:$0xff]  ;;  %v343_v50 = vand.u32 2147483647, %v1519_v47 }
  0x58   :  { %v458_v60 = vmul.f32 0.05, %v450_v52  ;;  %v406_v8 = vmul.f32 %v1119_v42, %v405_v58  ;;  %1126 = vpow2.f32 %v170_v25  ;;  %v344_v45 = vand.u32 2147483647, %v1516_v44 }
  0x59   :  { %v1497_v62 = vsub.f32 %v568_v48, %v584_v54  ;;  %v222_v52 = vmul.f32 1.442695, %v215_v33  ;;  %v1524_v54 = vld [vmem:[#allocation6 + $0x128] sm:$0xff]  ;;  %v351_v58 = vsub.f32 0.0, %v343_v50  ;;  %v262_v33 = vmul.f32 %v1444_v55, %v1444_v55 }
  0x5a   :  { %v466_v4 = vmul.f32 %v458_v60, %v309_v57  ;;  %v352_v49 = vsub.f32 0.0, %v344_v45  ;;  %v342_v56 = vand.u32 2147483647, %v1524_v54  ;;  %v336_v50 = vmax.f32 %v1516_v44, 0.0 }
  0x5b   :  { %v360_v2 = vmul.f32 1.442695, %v351_v58 }
  0x5c   :  { %v1123_v10 = vpop.eup %1122  ;;  %v474_v11 = vsel %vm90_vm4, %v466_v4, 0.0  ;;  %v362_v57 = vmul.f32 1.442695, %v352_v49 }
  0x5d   :  { %v1503_v14 = vadd.f32 %v474_v11, %v291_v1  ;;  %v555_v7 = vmul.f32 %v1121_v63, %v474_v11  ;;  %v403_v15 = vmul.f32 0.6931472, %v1123_v10  ;;  %v1125_v34 = vpop.eup %1124  ;;  %v350_v63 = vsub.f32 0.0, %v342_v56 }
  0x5e   :  { %v1127_v48 = vpop.eup %1126  ;;  %1128 = vpow2.f32 %v362_v57  ;;  %v534_v11 = vsub.f32 0.0, %v1390_v35 }
  0x5f   :  { %517 = vmatpush.msra.mxu1 %v1503_v14  ;;  %v575_v19 = vmul.f32 0.5, %v555_v7  ;;  %v409_v20 = vsel %vm408_vm9, %v406_v8, %v403_v15  ;;  %v172_v60 = vadd.f32 1.0, %v1127_v48  ;;  %1130 = vpow2.f32 %v222_v52 }
  0x60   :  { %v449_v21 = vadd.f32 %v409_v20, %v337_v13  ;;  %1132 = vpow2.f32 %v360_v2  ;;  %v358_v1 = vmul.f32 1.442695, %v350_v63  ;;  %v175_v4 = vmul.f32 -0.5, %v1127_v48 }
  0x61   :  { %v583_v22 = vmul.f32 %v575_v19, %v555_v7  ;;  %1134 = vlog2.f32 %v172_v60 }
  0x62   :  { %v457_v24 = vmul.f32 0.05, %v449_v21  ;;  %1136 = vpow2.f32 %v358_v1  ;;  %v176_v7 = vadd.f32 1.0, %v175_v4  ;;  %v549_v21 = vmul.f32 1.442695, %v534_v11 }
  0x63   :  { %v1507_v30 = vsub.f32 %v567_v18, %v583_v22  ;;  %v178_v18 = vand.u32 2147483647, %v1127_v48  ;;  %v334_v11 = vmax.f32 %v1524_v54, 0.0 }
  0x64   :  { %v465_v37 = vmul.f32 %v457_v24, %v308_v23  ;;  %v1129_v5 = vpop.eup %1128  ;;  %v265_v23 = vmul.f32 %v1429_v31, %v1429_v31  ;;  %v177_v25 = vmul.f32 %v1127_v48, %v176_v7  ;;  %v167_v31 = vmax.f32 %v1495_v59, 0.0 }
  0x65   :  { %v1131_v6 = vpop.eup %1130  ;;  %v392_v8 = vadd.f32 1.0, %v1129_v5  ;;  %v395_v22 = vmul.f32 -0.5, %v1129_v5  ;;  %vm1535_vm10 = vcmp.lt.f32.partialorder %v178_v18, 0.0004427343  ;;  %v335_v59 = vmax.f32 %v1519_v47, 0.0 }
  0x66   :  { %v473_v38 = vsel %vm90_vm4, %v465_v37, 0.0  ;;  %v1133_v10 = vpop.eup %1132  ;;  %v1529_v20 = vmul.f32 %v1131_v6, %v1426_v26  ;;  %v263_v26 = vmul.f32 %v1440_v51, %v1440_v51 }
  0x67   :  { %v1511_v17 = vadd.f32 %v473_v38, %v290_v36  ;;  %v554_v40 = vmul.f32 %v1125_v34, %v473_v38  ;;  %v1135_v13 = vpop.eup %1134  ;;  %1138 = vlog2.f32 %v392_v8  ;;  %v383_v15 = vadd.f32 1.0, %v1133_v10 }
  0x68   :  { %v1137_v16 = vpop.eup %1136  ;;  %v174_v24 = vmul.f32 0.6931472, %v1135_v13  ;;  %v264_v34 = vmul.f32 %v1434_v39, %v1434_v39  ;;  %v396_v37 = vadd.f32 1.0, %v395_v22  ;;  %v386_v38 = vmul.f32 -0.5, %v1133_v10 }
  0x69   :  { %518 = vmatpush.msra.mxu1 %v1511_v17  ;;  %v574_v42 = vmul.f32 0.5, %v554_v40  ;;  %1140 = vlog2.f32 %v383_v15  ;;  %v374_v19 = vadd.f32 1.0, %v1137_v16  ;;  %v377_v39 = vmul.f32 -0.5, %v1137_v16 }
  0x6a   :  { %v397_v45 = vmul.f32 %v1129_v5, %v396_v37  ;;  %v180_v49 = vsel %vm1535_vm10, %v177_v25, %v174_v24  ;;  %v389_v52 = vand.u32 2147483647, %v1133_v10  ;;  %v380_v2 = vand.u32 2147483647, %v1137_v16 }
  0x6b   :  { %v582_v46 = vmul.f32 %v574_v42, %v554_v40  ;;  %1142 = vlog2.f32 %v374_v19  ;;  %v378_v56 = vadd.f32 1.0, %v377_v39  ;;  %v267_v63 = vmul.f32 200.0, %v263_v26  ;;  %v288_v39 = vld [vmem:[#allocation6 + $0xb0] sm:$0xff] }
  0x6c   :  { %vm390_vm12 = vcmp.lt.f32.partialorder %v389_v52, 0.0004427343  ;;  %vm381_vm13 = vcmp.lt.f32.partialorder %v380_v2, 0.0004427343  ;;  %v266_v13 = vmul.f32 200.0, %v262_v33  ;;  %1144 = vpow2.f32 %v549_v21 }
  0x6d   :  { %v1522_v53 = vsub.f32 %v566_v41, %v582_v46  ;;  %v1139_v40 = vpop.eup %1138  ;;  %v398_v41 = vand.u32 2147483647, %v1129_v5  ;;  %v387_v46 = vadd.f32 1.0, %v386_v38  ;;  %v379_v5 = vmul.f32 %v1137_v16, %v378_v56  ;;  %v306_v38 = vld [vmem:[#allocation8 + $0x30] sm:$0xff] }
  0x6e   :  { %v394_v42 = vmul.f32 0.6931472, %v1139_v40  ;;  %v181_v7 = vadd.f32 %v180_v49, %v167_v31  ;;  %v239_v18 = vmul.f32 0.5, %v1529_v20  ;;  %v1550_v25 = vmul.f32 200.0, %v265_v23  ;;  %v289_v40 = vld [vmem:[#allocation6 + $0xb8] sm:$0xff]  ;;  %v287_v56 = vld [vmem:[#allocation6 + $0xa8] sm:$0xff] }
  0x6f   :  { %v1141_v48 = vpop.eup %1140  ;;  %vm399_vm11 = vcmp.lt.f32.partialorder %v398_v41, 0.0004427343  ;;  %v388_v58 = vmul.f32 %v1133_v10, %v387_v46  ;;  %v307_v10 = vld [vmem:[#allocation8 + $0x38] sm:$0xff]  ;;  %v1552_v36 = vmul.f32 200.0, %v264_v34  ;;  %v271_v16 = vsub.f32 2.0767937, %v267_v63 }
  0x70   :  { %v400_v57 = vsel %vm399_vm11, %v397_v45, %v394_v42  ;;  %v385_v51 = vmul.f32 0.6931472, %v1141_v48  ;;  %v624_v37 = vmul.f32 %v1466_v32, %v1466_v32  ;;  %v622_v21 = vmul.f32 %v1490_v43, %v1490_v43  ;;  %v305_v42 = vld [vmem:[#allocation8 + $0x28] sm:$0xff]  ;;  %v78_v46 = vld [vmem:[#allocation8 + $0x20] sm:$0x1] }
  0x71   :  { %v1143_v55 = vpop.eup %1142  ;;  %v448_v60 = vadd.f32 %v400_v57, %v336_v50  ;;  %v270_v41 = vsub.f32 2.0767937, %v266_v13  ;;  %v182_v23 = vmul.f32 0.05, %v181_v7  ;;  %v243_v45 = vmul.f32 %v239_v18, %v1529_v20 }
  0x72   :  { %v391_v1 = vsel %vm390_vm12, %v388_v58, %v385_v51  ;;  %v376_v4 = vmul.f32 0.6931472, %v1143_v55  ;;  %v621_v32 = vmul.f32 %v1503_v14, %v1503_v14  ;;  %v1145_v49 = vpop.eup %1144  ;;  %v1572_v57 = vmul.f32 200.0, %v624_v37 }
  0x73   :  { %v456_v6 = vmul.f32 0.05, %v448_v60  ;;  %v447_v8 = vadd.f32 %v391_v1, %v335_v59  ;;  %v1577_v14 = vsel %vm90_vm4, %v271_v16, 0.0  ;;  %v630_v51 = vmul.f32 200.0, %v622_v21 }
  0x74   :  { %v382_v15 = vsel %vm381_vm13, %v379_v5, %v376_v4  ;;  %v620_v58 = vmul.f32 %v1511_v17, %v1511_v17  ;;  %v1587_v60 = vsel %vm90_vm4, %v270_v41, 0.0  ;;  %v623_v59 = vmul.f32 %v1480_v9, %v1480_v9 }
  0x75   :  { %v464_v19 = vmul.f32 %v456_v6, %v307_v10  ;;  %v455_v22 = vmul.f32 0.05, %v447_v8  ;;  %v446_v24 = vadd.f32 %v382_v15, %v334_v11  ;;  %v183_v2 = vmul.f32 %v182_v23, %v78_v46  ;;  %v72_v8 = vld [vmem:[#allocation6 + $0xa0] sm:$0x1] }
  0x76   :  { %v558_v1 = vmul.f32 %v1145_v49, %v1463_v28  ;;  %v629_v4 = vmul.f32 200.0, %v621_v32  ;;  %v529_v17 = vsub.f32 0.0, %v1516_v44  ;;  %v528_v11 = vsub.f32 0.0, %v1519_v47 }
  0x77   :  { %v1560_v26 = vsel %vm90_vm4, %v464_v19, 0.0  ;;  %v463_v33 = vmul.f32 %v455_v22, %v306_v38  ;;  %v454_v31 = vmul.f32 0.05, %v446_v24  ;;  %v527_v7 = vsub.f32 0.0, %v1524_v54 }
  0x78   :  { %v498_v34 = vadd.f32 %v1560_v26, %v289_v40  ;;  %v638_v9 = vsub.f32 2.0767937, %v630_v51  ;;  %v628_v10 = vmul.f32 200.0, %v620_v58  ;;  %v539_v15 = vmul.f32 1.442695, %v529_v17  ;;  %v1648_v17 = vld [vmem:[#allocation6 + $0x1f8] sm:$0xff] }
  0x79   :  { %v1568_v43 = vsel %vm90_vm4, %v463_v33, 0.0  ;;  %v462_v48 = vmul.f32 %v454_v31, %v305_v42  ;;  %v1597_v19 = vmul.f32 200.0, %v623_v59  ;;  %v1601_v28 = vsel %vm90_vm4, %v183_v2, 0.0 }
  0x7a   :  { %519 = vmatpush.msra.mxu1 %v498_v34  ;;  %v497_v20 = vadd.f32 %v1568_v43, %v288_v39  ;;  %v619_v5 = vmul.f32 %v498_v34, %v498_v34  ;;  %v537_v22 = vmul.f32 1.442695, %v528_v11  ;;  %v535_v24 = vmul.f32 1.442695, %v527_v7 }
  0x7b   :  { %v1583_v55 = vsel %vm90_vm4, %v462_v48, 0.0  ;;  %v637_v16 = vsub.f32 2.0767937, %v629_v4  ;;  %v248_v21 = vsel %vm90_vm4, %v1457_v12, 0.0  ;;  %1146 = vpow2.f32 %v539_v15  ;;  %v1646_v4 = vld [vmem:[#allocation6 + $0x1f0] sm:$0xff] }
  0x7c   :  { %520 = vmatpush.msra.mxu1 %v497_v20  ;;  %v496_v63 = vadd.f32 %v1583_v55, %v287_v56  ;;  %v618_v13 = vmul.f32 %v497_v20, %v497_v20  ;;  %v627_v37 = vmul.f32 200.0, %v619_v5  ;;  %v235_v33 = vsub.f32 -0.9189385, %v1372_v0 }
  0x7d   :  { %v249_v31 = vsel %vm90_vm4, %v1454_v3, 0.0  ;;  %v636_v41 = vsub.f32 2.0767937, %v628_v10  ;;  %v1611_v23 = vadd.f32 %v1601_v28, %v72_v8  ;;  %1148 = vpow2.f32 %v537_v22  ;;  %v1666_v22 = vld [vmem:[#allocation6 + $0x218] sm:$0xff] }
  0x7e   :  { %521 = vmatpush.msra.mxu1 %v496_v63  ;;  %v617_v18 = vmul.f32 %v496_v63, %v496_v63  ;;  %v626_v38 = vmul.f32 200.0, %v618_v13  ;;  %v250_v34 = vsel %vm90_vm4, %v1448_v61, 0.0  ;;  %1150 = vpow2.f32 %v535_v24  ;;  %v1668_v24 = vld [vmem:[#allocation6 + $0x220] sm:$0xff] }
  0x7f   :  { %v247_v12 = vsub.f32 %v235_v33, %v243_v45  ;;  %v257_v32 = vadd.f32 %v249_v31, %v248_v21  ;;  %v578_v46 = vmul.f32 0.5, %v558_v1  ;;  %v1619_v0 = vsel %vm90_vm4, %v638_v9, 0.0 }
  0x80   :  { %v625_v40 = vmul.f32 200.0, %v617_v18  ;;  %v635_v3 = vsub.f32 2.0767937, %v627_v37  ;;  %v634_v39 = vsub.f32 2.0767937, %v626_v38  ;;  %v1624_v48 = vsel %vm90_vm4, %v1507_v30, 0.0 }
  0x81   :  { %v251_v61 = vsel %vm90_vm4, %v247_v12, 0.0  ;;  %v258_v20 = vadd.f32 %v257_v32, %v250_v34  ;;  %v1630_v45 = vsel %vm90_vm4, %v637_v16, 0.0  ;;  %v1635_v51 = vsel %vm90_vm4, %v1522_v53, 0.0  ;;  %v1147_v56 = vpop.eup %1146  ;;  %v1664_v18 = vld [vmem:[#allocation6 + $0x210] sm:$0xff]  ;;  %v1671_v37 = vld [vmem:[#allocation6 + $0x228] sm:$0xff] }
  0x82   :  { %v633_v49 = vsub.f32 2.0767937, %v625_v40  ;;  %v1639_v58 = vsel %vm90_vm4, %v636_v41, 0.0  ;;  %v190_v30 = vperm.slane %v1611_v23, 0  ;;  %v565_v59 = vsub.f32 -0.9189385, %v1516_v44 }
  0x83   :  { %v564_v2 = vsub.f32 -0.9189385, %v1519_v47  ;;  %v1644_v63 = vadd.f32 %v258_v20, %v251_v61  ;;  %v1149_v5 = vpop.eup %1148  ;;  %v553_v53 = vmul.f32 %v1147_v56, %v1560_v26  ;;  %v643_v8 = vsel %vm90_vm4, %v635_v3, 0.0  ;;  %v1656_v44 = vld [vmem:[#allocation6 + $0x200] sm:$0xff]  ;;  %v1658_v47 = vld [vmem:[#allocation6 + $0x208] sm:$0xff] }
  0x84   :  { %v642_v11 = vsel %vm90_vm4, %v634_v39, 0.0  ;;  %v563_v13 = vsub.f32 -0.9189385, %v1524_v54  ;;  %v1151_v7 = vpop.eup %1150  ;;  %v586_v9 = vmul.f32 %v578_v46, %v558_v1  ;;  %v552_v10 = vmul.f32 %v1149_v5, %v1568_v43 }
  0x85   :  { %v641_v15 = vsel %vm90_vm4, %v633_v49, 0.0  ;;  %v570_v26 = vsub.f32 -0.9189385, %v1390_v35  ;;  %v573_v54 = vmul.f32 0.5, %v553_v53  ;;  %v551_v16 = vmul.f32 %v1151_v7, %v1583_v55 }
  0x86   :  { %v708_v1 = vand.u32 2147483647, %v1646_v4  ;;  %v709_v43 = vand.u32 2147483647, %v1648_v17  ;;  %v572_v38 = vmul.f32 0.5, %v552_v10  ;;  %v1678_v35 = vsel %vm90_vm4, %v1497_v62, 0.0 }
  0x87   :  { %v710_v21 = vand.u32 2147483647, %v1656_v44  ;;  %v711_v40 = vand.u32 2147483647, %v1658_v47  ;;  %v581_v33 = vmul.f32 %v573_v54, %v553_v53  ;;  %v571_v31 = vmul.f32 0.5, %v551_v16 }
  0x88   :  { %v712_v55 = vand.u32 2147483647, %v1664_v18  ;;  %v713_v41 = vand.u32 2147483647, %v1666_v22  ;;  %v580_v34 = vmul.f32 %v572_v38, %v552_v10  ;;  %v714_v12 = vand.u32 2147483647, %v1668_v24 }
  0x89   :  { %v715_v32 = vand.u32 2147483647, %v1671_v37  ;;  %v716_v46 = vsub.f32 0.0, %v708_v1  ;;  %v589_v3 = vsub.f32 %v565_v59, %v581_v33  ;;  %v579_v39 = vmul.f32 %v571_v31, %v551_v16 }
  0x8a   :  { %v717_v62 = vsub.f32 0.0, %v709_v43  ;;  %v718_v49 = vsub.f32 0.0, %v710_v21  ;;  %v588_v61 = vsub.f32 %v564_v2, %v580_v34  ;;  %v601_v20 = vsel %vm90_vm4, %v1485_v27, 0.0 }
  0x8b   :  { %v719_v56 = vsub.f32 0.0, %v711_v40  ;;  %v720_v5 = vsub.f32 0.0, %v712_v55  ;;  %v597_v53 = vsel %vm90_vm4, %v589_v3, 0.0  ;;  %v587_v7 = vsub.f32 %v563_v13, %v579_v39 }
  0x8c   :  { %v653_v10 = vadd.f32 %v642_v11, %v641_v15  ;;  %v721_v54 = vsub.f32 0.0, %v713_v41  ;;  %v596_v1 = vsel %vm90_vm4, %v588_v61, 0.0  ;;  %v722_v59 = vsub.f32 0.0, %v714_v12 }
  0x8d   :  { %v724_v16 = vmul.f32 1.442695, %v716_v46  ;;  %v726_v43 = vmul.f32 1.442695, %v717_v62  ;;  %v595_v2 = vsel %vm90_vm4, %v587_v7, 0.0  ;;  %v723_v38 = vsub.f32 0.0, %v715_v32 }
  0x8e   :  { %v728_v21 = vmul.f32 1.442695, %v718_v49  ;;  %v730_v27 = vmul.f32 1.442695, %v719_v56  ;;  %v608_v40 = vadd.f32 %v596_v1, %v595_v2  ;;  %v594_v33 = vsub.f32 %v570_v26, %v586_v9  ;;  %v1701_v9 = vld [vmem:[#allocation6 + $0x169] sm:$0x1] }
  0x8f   :  { %1152 = vpow2.f32 %v724_v16  ;;  %v732_v31 = vmul.f32 1.442695, %v720_v5  ;;  %v700_v13 = vmax.f32 %v1646_v4, 0.0  ;;  %v701_v11 = vmax.f32 %v1648_v17, 0.0 }
  0x90   :  { %1154 = vpow2.f32 %v726_v43  ;;  %v734_v15 = vmul.f32 1.442695, %v721_v54  ;;  %v609_v55 = vadd.f32 %v608_v40, %v597_v53  ;;  %v702_v41 = vmax.f32 %v1656_v44, 0.0 }
  0x91   :  { %1156 = vpow2.f32 %v728_v21  ;;  %v736_v34 = vmul.f32 1.442695, %v722_v59  ;;  %v1698_v12 = vadd.f32 %v653_v10, %v643_v8  ;;  %v703_v32 = vmax.f32 %v1658_v47, 0.0 }
  0x92   :  { %1158 = vpow2.f32 %v730_v27  ;;  %v738_v46 = vmul.f32 1.442695, %v723_v38  ;;  %v602_v26 = vsel %vm90_vm4, %v594_v33, 0.0  ;;  %v610_v3 = vadd.f32 %v609_v55, %v1635_v51 }
  0x93   :  { %v704_v39 = vmax.f32 %v1664_v18, 0.0  ;;  %1160 = vpow2.f32 %v732_v31  ;;  %v705_v62 = vmax.f32 %v1666_v22, 0.0  ;;  %v706_v49 = vmax.f32 %v1668_v24, 0.0 }
  0x94   :  { %v707_v8 = vmax.f32 %v1671_v37, 0.0  ;;  %1162 = vpow2.f32 %v734_v15  ;;  %v611_v5 = vadd.f32 %v610_v3, %v1624_v48  ;;  %v892_v53 = vsub.f32 0.0, %v1646_v4 }
  0x95   :  { %v1153_v61 = vpop.eup %1152  ;;  %1164 = vpow2.f32 %v736_v34  ;;  %v479_v7 = vand.u32 2147483647, %v1701_v9  ;;  %vm992_vm10 = vcmask 1040384  }
  0x96   :  { %v1155_v51 = vpop.eup %1154  ;;  %1166 = vpow2.f32 %v738_v46  ;;  %v740_v54 = vadd.f32 1.0, %v1153_v61  ;;  %v743_v1 = vmul.f32 -0.5, %v1153_v61  ;;  %v612_v16 = vadd.f32 %v611_v5, %v1678_v35 }
  0x97   :  { %v1157_v59 = vpop.eup %1156  ;;  %v746_v43 = vand.u32 2147483647, %v1153_v61  ;;  %v749_v2 = vadd.f32 1.0, %v1155_v51  ;;  %v752_v38 = vmul.f32 -0.5, %v1155_v51  ;;  %v755_v40 = vand.u32 2147483647, %v1155_v51 }
  0x98   :  { %v1159_v21 = vpop.eup %1158  ;;  %1168 = vlog2.f32 %v740_v54  ;;  %v744_v27 = vadd.f32 1.0, %v743_v1  ;;  %v613_v31 = vadd.f32 %v612_v16, %v601_v20  ;;  %v758_v46 = vadd.f32 1.0, %v1157_v59 }
  0x99   :  { %v1161_v33 = vpop.eup %1160  ;;  %1170 = vlog2.f32 %v749_v2  ;;  %v753_v15 = vadd.f32 1.0, %v752_v38  ;;  %vm1719_vm14 = vcmp.lt.f32.partialorder %v746_v43, 0.0004427343  ;;  %v761_v3 = vmul.f32 -0.5, %v1157_v59 }
  0x9a   :  { %v1163_v55 = vpop.eup %1162  ;;  %v1717_v34 = vmul.f32 %v1153_v61, %v744_v27  ;;  %v614_v5 = vadd.f32 %v613_v31, %v602_v26  ;;  %vm1725_vm15 = vcmp.lt.f32.partialorder %v755_v40, 0.0004427343  ;;  %v764_v20 = vand.u32 2147483647, %v1157_v59 }
  0x9b   :  { %v767_v54 = vadd.f32 1.0, %v1159_v21  ;;  %1172 = vlog2.f32 %v758_v46  ;;  %v762_v61 = vadd.f32 1.0, %v761_v3  ;;  %v770_v16 = vmul.f32 -0.5, %v1159_v21 }
  0x9c   :  { %v773_v43 = vand.u32 2147483647, %v1159_v21  ;;  %v1732_v2 = vadd.f32 %v614_v5, %v1644_v63  ;;  %v754_v38 = vmul.f32 %v1155_v51, %v753_v15  ;;  %vm1734_vm0 = vcmp.lt.f32.partialorder %v764_v20, 0.0004427343 }
  0x9d   :  { %1174 = vlog2.f32 %v767_v54  ;;  %v763_v26 = vmul.f32 %v1157_v59, %v762_v61  ;;  %v771_v31 = vadd.f32 1.0, %v770_v16  ;;  %v779_v6 = vmul.f32 -0.5, %v1161_v33  ;;  %v684_v16 = vld [vmem:[#allocation8 + $0x80] sm:$0xff] }
  0x9e   :  { %v782_v46 = vand.u32 2147483647, %v1161_v33  ;;  %v785_v3 = vadd.f32 1.0, %v1163_v55  ;;  %vm1738_vm1 = vcmp.lt.f32.partialorder %v773_v43, 0.0004427343  ;;  %v788_v15 = vmul.f32 -0.5, %v1163_v55 }
  0x9f   :  { %v780_v51 = vadd.f32 1.0, %v779_v6  ;;  %v772_v5 = vmul.f32 %v1159_v21, %v771_v31  ;;  %v791_v20 = vand.u32 2147483647, %v1163_v55 }
  0xa0   :  { %vm1747_vm2 = vcmp.lt.f32.partialorder %v782_v46, 0.0004427343 }
  0xa1   :  { %vm1755_vm5 = vcmp.lt.f32.partialorder %v791_v20, 0.0004427343 }
  0xb6   :  { %v208_v56 = vpop.f32.mrf.mxu0 }
  0xb7   :  { %v209_v10 = vadd.f32 %v208_v56, %v190_v30  ;;  %v893_v30 = vsub.f32 0.0, %v1648_v17  ;;  %v1723_v56 = vpop.eup %1164 }
  0xb8   :  { %v1729_v1 = vpop.eup %1166  ;;  %v794_v43 = vadd.f32 1.0, %v1723_v56  ;;  %v797_v35 = vmul.f32 -0.5, %v1723_v56 }
  0xb9   :  { %v211_v48 = vmax.f32 %v209_v10, 0.0  ;;  %v1169_v27 = vpop.eup %1168 }
  0xba   :  { %v1171_v42 = vpop.eup %1170  ;;  %v742_v50 = vmul.f32 0.6931472, %v1169_v27  ;;  %v781_v27 = vmul.f32 %v1161_v33, %v780_v51  ;;  %v798_v31 = vadd.f32 1.0, %v797_v35 }
  0xbb   :  { %522 = vmatmul.f32.vlgmr.msra.gmra.mxu1 %v211_v48  ;;  %v776_v48 = vadd.f32 1.0, %v1161_v33  ;;  %v751_v52 = vmul.f32 0.6931472, %v1171_v42  ;;  %v1173_v54 = vpop.eup %1172  ;;  %v789_v42 = vadd.f32 1.0, %v788_v15  ;;  %v806_v33 = vmul.f32 -0.5, %v1729_v1 }
  0xbc   :  { %v748_v59 = vsel %vm1719_vm14, %v1717_v34, %v742_v50  ;;  %v1175_v6 = vpop.eup %1174  ;;  %v803_v50 = vadd.f32 1.0, %v1729_v1  ;;  %v809_v15 = vand.u32 2147483647, %v1729_v1  ;;  %v1794_v34 = vsub.f32 0.0, %v479_v7  ;;  %v688_v7 = vld [vmem:[#allocation8 + $0xa0] sm:$0xff] }
  0xbd   :  { %1176 = vlog2.f32 %v776_v48  ;;  %v757_v61 = vsel %vm1725_vm15, %v754_v38, %v751_v52  ;;  %v760_v48 = vmul.f32 0.6931472, %v1173_v54  ;;  %v769_v21 = vmul.f32 0.6931472, %v1175_v6  ;;  %v682_v6 = vld [vmem:[#allocation8 + $0x70] sm:$0xff] }
  0xbe   :  { %1178 = vlog2.f32 %v785_v3  ;;  %v800_v52 = vand.u32 2147483647, %v1723_v56  ;;  %v790_v51 = vmul.f32 %v1163_v55, %v789_v42  ;;  %v813_v40 = vadd.f32 %v757_v61, %v701_v11 }
  0xbf   :  { %1180 = vlog2.f32 %v794_v43  ;;  %v766_v38 = vsel %vm1734_vm0, %v763_v26, %v760_v48  ;;  %v775_v46 = vsel %vm1738_vm1, %v772_v5, %v769_v21  ;;  %v807_v43 = vadd.f32 1.0, %v806_v33  ;;  %v683_v48 = vld [vmem:[#allocation8 + $0x78] sm:$0xff]  ;;  %v686_v33 = vld [vmem:[#allocation8 + $0x90] sm:$0xff] }
  0xc0   :  { %1182 = vlog2.f32 %v803_v50  ;;  %vm1766_vm6 = vcmp.lt.f32.partialorder %v800_v52, 0.0004427343  ;;  %v812_v26 = vadd.f32 %v748_v59, %v700_v13  ;;  %v799_v55 = vmul.f32 %v1723_v56, %v798_v31  ;;  %v685_v31 = vld [vmem:[#allocation8 + $0x88] sm:$0xff] }
  0xc1   :  { %v814_v42 = vadd.f32 %v766_v38, %v702_v41  ;;  %vm1779_vm7 = vcmp.lt.f32.partialorder %v809_v15, 0.0004427343  ;;  %v815_v13 = vadd.f32 %v775_v46, %v703_v32  ;;  %v808_v41 = vmul.f32 %v1729_v1, %v807_v43 }
  0xc2   :  { %v820_v59 = vmul.f32 0.05, %v812_v26 }
  0xc3   :  { %v1177_v10 = vpop.eup %1176  ;;  %v822_v50 = vmul.f32 0.05, %v814_v42  ;;  %v823_v38 = vmul.f32 0.05, %v815_v13 }
  0xc4   :  { %v778_v3 = vmul.f32 0.6931472, %v1177_v10  ;;  %v1179_v20 = vpop.eup %1178  ;;  %v828_v46 = vmul.f32 %v820_v59, %v682_v6  ;;  %v689_v6 = vld [vmem:[#allocation8 + $0xa8] sm:$0xff]  ;;  %v898_v59 = vsub.f32 0.0, %v1668_v24 }
  0xc5   :  { %v787_v5 = vmul.f32 0.6931472, %v1179_v20  ;;  %v1181_v61 = vpop.eup %1180  ;;  %v894_v20 = vsub.f32 0.0, %v1656_v44  ;;  %v831_v54 = vmul.f32 %v823_v38, %v685_v31 }
  0xc6   :  { %v784_v63 = vsel %vm1747_vm2, %v781_v27, %v778_v3  ;;  %v821_v27 = vmul.f32 0.05, %v813_v40  ;;  %v1183_v21 = vpop.eup %1182  ;;  %v796_v52 = vmul.f32 0.6931472, %v1181_v61  ;;  %v830_v40 = vmul.f32 %v822_v50, %v684_v16 }
  0xc7   :  { %v816_v11 = vadd.f32 %v784_v63, %v704_v39  ;;  %v793_v56 = vsel %vm1755_vm5, %v790_v51, %v787_v5  ;;  %v805_v39 = vmul.f32 0.6931472, %v1183_v21  ;;  %v687_v51 = vld [vmem:[#allocation8 + $0x98] sm:$0xff]  ;;  %v896_v63 = vsub.f32 0.0, %v1664_v18 }
  0xc8   :  { %v817_v10 = vadd.f32 %v793_v56, %v705_v62  ;;  %v829_v3 = vmul.f32 %v821_v27, %v683_v48  ;;  %v802_v1 = vsel %vm1766_vm6, %v799_v55, %v796_v52  ;;  %v895_v62 = vsub.f32 0.0, %v1658_v47 }
  0xc9   :  { %v824_v32 = vmul.f32 0.05, %v816_v11  ;;  %v811_v43 = vsel %vm1779_vm7, %v808_v41, %v805_v39  ;;  %v818_v26 = vadd.f32 %v802_v1, %v706_v49  ;;  %v1809_v42 = vsel %vm691_vm3, %v828_v46, 0.0 }
  0xca   :  { %v825_v15 = vmul.f32 0.05, %v817_v10  ;;  %v819_v5 = vadd.f32 %v811_v43, %v707_v8  ;;  %v1813_v13 = vsel %vm691_vm3, %v829_v3, 0.0  ;;  %v897_v49 = vsub.f32 0.0, %v1666_v22 }
  0xcb   :  { %v832_v55 = vmul.f32 %v824_v32, %v686_v33  ;;  %v826_v48 = vmul.f32 0.05, %v818_v26  ;;  %v899_v8 = vsub.f32 0.0, %v1671_v37  ;;  %v900_v61 = vmul.f32 1.442695, %v892_v53 }
  0xcc   :  { %v833_v35 = vmul.f32 %v825_v15, %v687_v51  ;;  %v827_v11 = vmul.f32 0.05, %v819_v5  ;;  %v902_v56 = vmul.f32 1.442695, %v893_v30  ;;  %v904_v41 = vmul.f32 1.442695, %v894_v20 }
  0xcd   :  { %v834_v16 = vmul.f32 %v826_v48, %v688_v7  ;;  %v906_v27 = vmul.f32 1.442695, %v895_v62  ;;  %v1824_v21 = vsel %vm691_vm3, %v830_v40, 0.0  ;;  %1184 = vpow2.f32 %v900_v61 }
  0xce   :  { %v835_v50 = vmul.f32 %v827_v11, %v689_v6  ;;  %v908_v52 = vmul.f32 1.442695, %v896_v63  ;;  %v1828_v10 = vsel %vm691_vm3, %v831_v54, 0.0  ;;  %v1832_v53 = vsel %vm691_vm3, %v832_v55, 0.0 }
  0xcf   :  { %1186 = vpow2.f32 %v902_v56  ;;  %v910_v38 = vmul.f32 1.442695, %v897_v49  ;;  %v1836_v30 = vsel %vm691_vm3, %v833_v35, 0.0  ;;  %v1840_v32 = vsel %vm691_vm3, %v834_v16, 0.0 }
  0xd0   :  { %1188 = vpow2.f32 %v904_v41  ;;  %v912_v31 = vmul.f32 1.442695, %v898_v59  ;;  %v1844_v33 = vsel %vm691_vm3, %v835_v50, 0.0  ;;  %v914_v39 = vmul.f32 1.442695, %v899_v8 }
  0xd1   :  { %1190 = vpow2.f32 %v906_v27  ;;  %v928_v46 = vsub.f32 -0.9189385, %v1646_v4  ;;  %v929_v3 = vsub.f32 -0.9189385, %v1648_v17  ;;  %v930_v51 = vsub.f32 -0.9189385, %v1656_v44 }
  0xd2   :  { %1192 = vpow2.f32 %v908_v52  ;;  %v931_v1 = vsub.f32 -0.9189385, %v1658_v47  ;;  %v932_v15 = vsub.f32 -0.9189385, %v1664_v18  ;;  %v1984_v20 = vsub.f32 2.0767937, %v1552_v36 }
  0xd3   :  { %1194 = vpow2.f32 %v910_v38  ;;  %v282_v43 = vadd.f32 %v1577_v14, %v1587_v60  ;;  %v1185_v26 = vpop.eup %1184  ;;  %v933_v4 = vsub.f32 -0.9189385, %v1666_v22  ;;  %v1985_v17 = vsub.f32 2.0767937, %v1550_v25 }
  0xd4   :  { %v276_v62 = vsel %vm90_vm4, %v1984_v20, 0.0  ;;  %1196 = vpow2.f32 %v912_v31  ;;  %v655_v47 = vadd.f32 %v1698_v12, %v1639_v58  ;;  %v916_v36 = vmul.f32 %v1185_v26, %v1809_v42 }
  0xd5   :  { %v277_v44 = vsel %vm90_vm4, %v1985_v17, 0.0  ;;  %v1187_v18 = vpop.eup %1186  ;;  %1198 = vpow2.f32 %v914_v39  ;;  %v934_v40 = vsub.f32 -0.9189385, %v1668_v24  ;;  %v283_v63 = vadd.f32 %v282_v43, %v276_v62 }
  0xd6   :  { %v1189_v14 = vpop.eup %1188  ;;  %v917_v60 = vmul.f32 %v1187_v18, %v1813_v13  ;;  %v935_v22 = vsub.f32 -0.9189385, %v1671_v37  ;;  %v656_v25 = vadd.f32 %v655_v47, %v1630_v45  ;;  %v481_v7 = vmul.f32 1.442695, %v1794_v34 }
  0xd7   :  { %v1191_v5 = vpop.eup %1190  ;;  %v918_v54 = vmul.f32 %v1189_v14, %v1824_v21  ;;  %v936_v58 = vmul.f32 0.5, %v916_v36  ;;  %v284_v12 = vadd.f32 %v283_v63, %v277_v44  ;;  %v1986_v55 = vsub.f32 2.0767937, %v1597_v19 }
  0xd8   :  { %v1193_v6 = vpop.eup %1192  ;;  %v919_v48 = vmul.f32 %v1191_v5, %v1828_v10  ;;  %v937_v35 = vmul.f32 0.5, %v917_v60  ;;  %v657_v37 = vadd.f32 %v656_v25, %v1619_v0  ;;  %1200 = vpow2.f32 %v481_v7 }
  0xd9   :  { %v647_v24 = vsel %vm90_vm4, %v1986_v55, 0.0  ;;  %v1195_v45 = vpop.eup %1194  ;;  %v920_v34 = vmul.f32 %v1193_v6, %v1832_v53  ;;  %v938_v49 = vmul.f32 0.5, %v918_v54  ;;  %v944_v11 = vmul.f32 %v936_v58, %v916_v36 }
  0xda   :  { %v1987_v59 = vsub.f32 2.0767937, %v1572_v57  ;;  %v1197_v8 = vpop.eup %1196  ;;  %v921_v61 = vmul.f32 %v1195_v45, %v1836_v30  ;;  %v939_v16 = vmul.f32 0.5, %v919_v48  ;;  %v945_v56 = vmul.f32 %v937_v35, %v917_v60 }
  0xdb   :  { %v658_v41 = vadd.f32 %v657_v37, %v647_v24  ;;  %v1199_v27 = vpop.eup %1198  ;;  %v922_v0 = vmul.f32 %v1197_v8, %v1840_v32  ;;  %v940_v50 = vmul.f32 0.5, %v920_v34  ;;  %v946_v52 = vmul.f32 %v938_v49, %v918_v54 }
  0xdc   :  { %v648_v19 = vsel %vm90_vm4, %v1987_v59, 0.0  ;;  %v952_v38 = vsub.f32 %v928_v46, %v944_v11  ;;  %v923_v31 = vmul.f32 %v1199_v27, %v1844_v33  ;;  %v941_v39 = vmul.f32 0.5, %v921_v61  ;;  %v1899_v11 = vld [vmem:[#allocation6 + $0xa1] sm:$0x1] }
  0xdd   :  { %v947_v20 = vmul.f32 %v939_v16, %v919_v48  ;;  %v953_v57 = vsub.f32 %v929_v3, %v945_v56  ;;  %v942_v62 = vmul.f32 0.5, %v922_v0  ;;  %v948_v43 = vmul.f32 %v940_v50, %v920_v34 }
  0xde   :  { %v954_v26 = vsub.f32 %v930_v51, %v946_v52  ;;  %v960_v17 = vsel %vm691_vm3, %v952_v38, 0.0  ;;  %v1201_v44 = vpop.eup %1200  ;;  %v943_v47 = vmul.f32 0.5, %v923_v31  ;;  %v949_v18 = vmul.f32 %v941_v39, %v921_v61 }
  0xdf   :  { %v955_v36 = vsub.f32 %v931_v1, %v947_v20  ;;  %v961_v63 = vsel %vm691_vm3, %v953_v57, 0.0  ;;  %v950_v14 = vmul.f32 %v942_v62, %v922_v0  ;;  %v956_v46 = vsub.f32 %v932_v15, %v948_v43  ;;  %v1895_v15 = vld [vmem:[#allocation6 + $0x231] sm:$0x1]  ;;  %v313_v62 = vld [vmem:[#allocation8 + $0x68] sm:$0x1] }
  0xe0   :  { %v962_v60 = vsel %vm691_vm3, %v954_v26, 0.0  ;;  %v973_v25 = vadd.f32 %v961_v63, %v960_v17  ;;  %v951_v3 = vmul.f32 %v943_v47, %v923_v31  ;;  %v957_v7 = vsub.f32 %v933_v4, %v949_v18  ;;  %v671_v18 = vld [vmem:[#allocation6 + $0x1a8] sm:$0xff] }
  0xe1   :  { %v963_v51 = vsel %vm691_vm3, %v955_v36, 0.0  ;;  %v659_v5 = vadd.f32 %v658_v41, %v648_v19  ;;  %v483_v58 = vadd.f32 1.0, %v1201_v44  ;;  %v958_v55 = vsub.f32 %v934_v40, %v950_v14  ;;  %v670_v36 = vld [vmem:[#allocation6 + $0x1a0] sm:$0xff] }
  0xe2   :  { %v974_v54 = vadd.f32 %v973_v25, %v962_v60  ;;  %v964_v1 = vsel %vm691_vm3, %v956_v46, 0.0  ;;  %v486_v6 = vmul.f32 -0.5, %v1201_v44  ;;  %v959_v35 = vsub.f32 %v935_v22, %v951_v3 }
  0xe3   :  { %v660_v24 = vmul.f32 2.0, %v659_v5  ;;  %1202 = vlog2.f32 %v483_v58  ;;  %v965_v4 = vsel %vm691_vm3, %v957_v7, 0.0  ;;  %v489_v49 = vand.u32 2147483647, %v1201_v44 }
  0xe4   :  { %v975_v48 = vadd.f32 %v974_v54, %v963_v51  ;;  %v487_v45 = vadd.f32 1.0, %v486_v6  ;;  %v228_v40 = vsub.f32 0.0, %v1899_v11  ;;  %v966_v59 = vsel %vm691_vm3, %v958_v55, 0.0  ;;  %v668_v54 = vld [vmem:[#allocation6 + $0x190] sm:$0xff] }
  0xe5   :  { %v661_v37 = vadd.f32 %v660_v24, %v284_v12  ;;  %v845_v19 = vand.u32 2147483647, %v1895_v15  ;;  %v559_v22 = vsub.f32 0.0, %v1701_v9  ;;  %v967_v61 = vsel %vm691_vm3, %v959_v35, 0.0 }
  0xe6   :  { %v976_v34 = vadd.f32 %v975_v48, %v964_v1  ;;  %v488_v12 = vmul.f32 %v1201_v44, %v487_v45  ;;  %v478_v27 = vmax.f32 %v1701_v9, 0.0  ;;  %vm490_vm8 = vcmp.lt.f32.partialorder %v489_v49, 0.0004427343  ;;  %v303_v44 = vld [vmem:[#allocation6 + $0x168] sm:$0x1] }
  0xe7   :  { %983 = vadd.xlane.f32.xlu0 %v661_v37  ;;  %v846_v16 = vsub.f32 0.0, %v845_v19  ;;  %v229_v0 = vmul.f32 1.442695, %v228_v40  ;;  %v560_v31 = vmul.f32 1.442695, %v559_v22  ;;  %v278_v26 = vmul.f32 %v1611_v23, %v1611_v23  ;;  %v667_v48 = vld [vmem:[#allocation6 + $0x188] sm:$0xff] }
  0xe8   :  { %v977_v8 = vadd.f32 %v976_v34, %v965_v4  ;;  %v869_v7 = vadd.f32 %v1844_v33, %v671_v18  ;;  %v868_v51 = vadd.f32 %v1840_v32, %v670_v36  ;;  %v924_v5 = vsub.f32 0.0, %v1895_v15 }
  0xe9   :  { %v1203_v56 = vpop.eup %1202  ;;  %v847_v52 = vmul.f32 1.442695, %v846_v16  ;;  %v279_v25 = vmul.f32 200.0, %v278_v26  ;;  %v866_v32 = vadd.f32 %v1832_v53, %v668_v54  ;;  %v865_v49 = vadd.f32 %v1828_v10, %v667_v48 }
  0xea   :  { %v978_v41 = vadd.f32 %v977_v8, %v966_v59  ;;  %v485_v50 = vmul.f32 0.6931472, %v1203_v56  ;;  %880 = vmatpush.msra.mxu2 %v869_v7  ;;  %v925_v37 = vmul.f32 1.442695, %v924_v5  ;;  %v252_v56 = vsub.f32 -0.9189385, %v1899_v11 }
  0xeb   :  { %1204 = vpow2.f32 %v847_v52  ;;  %v280_v33 = vsub.f32 2.0767937, %v279_v25  ;;  %v968_v11 = vsub.f32 -0.9189385, %v1895_v15 }
  0xec   :  { %v979_v38 = vadd.f32 %v978_v41, %v967_v61  ;;  %v491_v39 = vsel %vm490_vm8, %v488_v12, %v485_v50  ;;  %1206 = vpow2.f32 %v229_v0  ;;  %881 = vmatpush.msra.mxu2 %v868_v51  ;;  %v603_v41 = vsub.f32 -0.9189385, %v1701_v9  ;;  %v690_v0 = vld [vmem:[#allocation8 + $0xb0] sm:$0x1] }
  0xed   :  { %v492_v57 = vadd.f32 %v491_v39, %v478_v27  ;;  %1208 = vpow2.f32 %v560_v31  ;;  %v281_v8 = vsel %vm90_vm4, %v280_v33, 0.0 }
  0xee   :  { %v980_v20 = vadd.f32 %v979_v38, %v1732_v2  ;;  %v669_v2 = vld [vmem:[#allocation6 + $0x198] sm:$0xff] }
  0xef   :  { %v493_v43 = vmul.f32 0.05, %v492_v57  ;;  %v867_v1 = vadd.f32 %v1836_v30, %v669_v2  ;;  %v844_v30 = vmax.f32 %v1895_v15, 0.0  ;;  %v664_v2 = vld [vmem:[#allocation6 + $0x170] sm:$0xff] }
  0xf0   :  { %1006 = vadd.xlane.f32.xlu1 %v980_v20  ;;  %v862_v15 = vadd.f32 %v1809_v42, %v664_v2 }
  0xf1   :  { %v494_v17 = vmul.f32 %v493_v43, %v313_v62  ;;  %v1205_v47 = vpop.eup %1204  ;;  %882 = vmatpush.msra.mxu2 %v867_v1 }
  0xf2   :  { %v849_v14 = vadd.f32 1.0, %v1205_v47  ;;  %v852_v46 = vmul.f32 -0.5, %v1205_v47  ;;  %v1207_v60 = vpop.eup %1206  ;;  %v855_v6 = vand.u32 2147483647, %v1205_v47 }
  0xf3   :  { %v495_v63 = vsel %vm90_vm4, %v494_v17, 0.0  ;;  %v1209_v23 = vpop.eup %1208  ;;  %v231_v24 = vmul.f32 %v1207_v60, %v1601_v28  ;;  %883 = vmatpush.msra.mxu2 %v866_v32 }
  0xf4   :  { %v1914_v3 = vadd.f32 %v495_v63, %v303_v44  ;;  %1210 = vlog2.f32 %v849_v14  ;;  %v853_v58 = vadd.f32 1.0, %v852_v46  ;;  %v562_v35 = vmul.f32 %v1209_v23, %v495_v63  ;;  %v666_v14 = vld [vmem:[#allocation6 + $0x180] sm:$0xff]  ;;  %v665_v46 = vld [vmem:[#allocation6 + $0x178] sm:$0xff] }
  0xf5   :  { %v253_v59 = vmul.f32 0.5, %v231_v24  ;;  %vm856_vm9 = vcmp.lt.f32.partialorder %v855_v6, 0.0004427343  ;;  %1212 = vpow2.f32 %v925_v37  ;;  %884 = vmatpush.msra.mxu2 %v865_v49  ;;  %v864_v60 = vadd.f32 %v1824_v21, %v666_v14 }
  0xf6   :  { %v649_v55 = vmul.f32 %v1914_v3, %v1914_v3  ;;  %v854_v45 = vmul.f32 %v1205_v47, %v853_v58  ;;  %v604_v28 = vmul.f32 0.5, %v562_v35  ;;  %v863_v25 = vadd.f32 %v1813_v13, %v665_v46 }
  0xf7   :  { %v254_v16 = vmul.f32 %v253_v59, %v231_v24  ;;  %885 = vmatpush.msra.mxu2 %v864_v60  ;;  %v505_v7 = vperm.slane %v1914_v3, 0 }
  0xf8   :  { %v650_v4 = vmul.f32 200.0, %v649_v55  ;;  %v605_v27 = vmul.f32 %v604_v28, %v562_v35 }
  0xf9   :  { %v255_v39 = vsub.f32 %v252_v56, %v254_v16  ;;  %886 = vmatpush.msra.mxu2 %v863_v25 }
  0xfa   :  { %v651_v34 = vsub.f32 2.0767937, %v650_v4  ;;  %v1211_v40 = vpop.eup %1210  ;;  %v606_v20 = vsub.f32 %v603_v41, %v605_v27 }
  0xfb   :  { %v851_v19 = vmul.f32 0.6931472, %v1211_v40  ;;  %v1213_v38 = vpop.eup %1212  ;;  %v256_v43 = vsel %vm90_vm4, %v255_v39, 0.0  ;;  %887 = vmatpush.msra.mxu2 %v862_v15 }
  0xfc   :  { %v652_v22 = vsel %vm90_vm4, %v651_v34, 0.0  ;;  %v607_v9 = vsel %vm90_vm4, %v606_v20, 0.0 }
  0xfd   :  { %v662_v53 = vmul.f32 2.0, %v652_v22  ;;  %v857_v61 = vsel %vm856_vm9, %v854_v45, %v851_v19  ;;  %v616_v44 = vadd.f32 %v607_v9, %v256_v43 }
  0xfe   :  { %v858_v10 = vadd.f32 %v857_v61, %v844_v30  ;;  %v680_v61 = vld [vmem:[#allocation6 + $0x230] sm:$0x1] }
  0xff   :  { %v663_v12 = vadd.f32 %v662_v53, %v281_v8 }
 0x100   :  { %v859_v50 = vmul.f32 0.05, %v858_v10 }
 0x101   :  { %v993_v52 = vsel %vm992_vm10, %v663_v12, 0.0 }
 0x102   :  { %994 = vadd.xlane.f32.xlu0 %v993_v52  ;;  %v860_v31 = vmul.f32 %v859_v50, %v690_v0 }
 0x104   :  { %v861_v57 = vsel %vm691_vm3, %v860_v31, 0.0 }
 0x105   :  { %v927_v62 = vmul.f32 %v1213_v38, %v861_v57  ;;  %v870_v10 = vadd.f32 %v861_v57, %v680_v61 }
 0x107   :  { %v969_v26 = vmul.f32 0.5, %v927_v62  ;;  %v871_v12 = vperm.slane %v870_v10, 0 }
 0x109   :  { %v970_v17 = vmul.f32 %v969_v26, %v927_v62 }
 0x10b   :  { %v971_v47 = vsub.f32 %v968_v11, %v970_v17 }
 0x10d   :  { %v972_v18 = vsel %vm691_vm3, %v971_v47, 0.0 }
 0x10e   :  { %v981_v36 = vadd.f32 %v972_v18, %v616_v44 }
 0x110   :  { %v1015_v63 = vsel %vm992_vm10, %v981_v36, 0.0 }
 0x111   :  { %1016 = vadd.xlane.f32.xlu1 %v1015_v63 }
 0x138   :  { %v523_v29 = vpop.f32.mrf.mxu1 }
 0x139   :  { %v524_v51 = vadd.f32 %v523_v29, %v505_v7 }
 0x13b   :  { %v526_v23 = vmax.f32 %v524_v51, 0.0 }
 0x13d   :  { %888 = vmatmul.f32.vlgmr.msra.gmra.mxu2 %v526_v23 }
 0x15a   :  { %v984_v5 = vpop.xlane.xlu0 %983 }
 0x15b   :  { %v985_v54 = vrot.slane %v984_v5, 4 }
 0x15d   :  { %v986_v58 = vadd.f32 %v985_v54, %v984_v5 }
 0x15f   :  { %v987_v55 = vrot.slane %v986_v58, 2 }
 0x161   :  { %v988_v21 = vadd.f32 %v987_v55, %v986_v58 }
 0x163   :  { %v1007_v1 = vpop.xlane.xlu1 %1006  ;;  %v989_v6 = vrot.slane %v988_v21, 1 }
 0x164   :  { %v1008_v24 = vrot.slane %v1007_v1, 4 }
 0x165   :  { %v990_v48 = vadd.f32 %v989_v6, %v988_v21 }
 0x166   :  { %v1009_v13 = vadd.f32 %v1008_v24, %v1007_v1 }
 0x167   :  { %1061 = vpush %v990_v48 }
 0x168   :  { %v1010_v42 = vrot.slane %v1009_v13, 2 }
 0x16a   :  { %v1011_v4 = vadd.f32 %v1010_v42, %v1009_v13 }
 0x16c   :  { %v1012_v37 = vrot.slane %v1011_v4, 1 }
 0x16e   :  { %v1013_v49 = vadd.f32 %v1012_v37, %v1011_v4 }
 0x175   :  { %v995_v35 = vpop.xlane.xlu0 %994 }
 0x176   :  { %v996_v33 = vrot.slane %v995_v35, 4 }
 0x178   :  { %v997_v3 = vadd.f32 %v996_v33, %v995_v35 }
 0x17a   :  { %v998_v32 = vrot.slane %v997_v3, 2 }
 0x17c   :  { %v999_v45 = vadd.f32 %v998_v32, %v997_v3 }
 0x17e   :  { %v1000_v34 = vrot.slane %v999_v45, 1 }
 0x180   :  { %v1001_v40 = vadd.f32 %v1000_v34, %v999_v45 }
 0x182   :  { %1063 = vpush %v1001_v40 }
 0x183   :  { %1065 = vpush %v1013_v49 }
 0x184   :  { %v1017_v59 = vpop.xlane.xlu1 %1016 }
 0x185   :  { %v1018_v30 = vrot.slane %v1017_v59, 4 }
 0x187   :  { %v1019_v28 = vadd.f32 %v1018_v30, %v1017_v59 }
 0x189   :  { %v1020_v19 = vrot.slane %v1019_v28, 2 }
 0x18b   :  { %v1021_v8 = vadd.f32 %v1020_v19, %v1019_v28 }
 0x18d   :  { %v1022_v22 = vrot.slane %v1021_v8, 1 }
 0x18f   :  { %v1023_v53 = vadd.f32 %v1022_v22, %v1021_v8 }
 0x191   :  { %1067 = vpush %v1023_v53 }
 0x198   :  { %s1062_s0 = spop %1061 }
 0x1b3   :  { %s1064_s2 = spop %1063 }
 0x1b4   :  { %s1003_s5 = sadd.f32 %s1064_s2, %s1062_s0  ;;  %s1066_s14 = spop %1065 }
 0x1b6   :  { %1005 = sst [smem:[#allocation10]] %s1003_s5 }
 0x1c0   :  { %v889_v16 = vpop.f32.mrf.mxu2 }
 0x1c1   :  { %v890_v56 = vadd.f32 %v889_v16, %v871_v12 }
 0x1c2   :  { %s1068_s15 = spop %1067 }
 0x1c3   :  { %982 = vst [vmem:[#allocation9] sm:$0xff] %v890_v56  ;;  %s1025_s16 = sadd.f32 %s1068_s15, %s1066_s14 }
 0x1c4   :  { %1038 = dma.vmem_to_hbm [thread:$0]  %s1034_s7, 128, %s1036_s10, [#allocation4]  }
 0x1c5   :  { %1027 = sst [smem:[#allocation10 + $0x1]] %s1025_s16 }
 0x1c6   :  { %1047 = dma.smem_to_hbm %s1337_s17, 16, %s1045_s13, [#allocation5]  }
 0x1c7   :  { %1327 = dma.done.wait [#allocation4], 128  }
 0x1c8   :  { %1328 = vsyncadd [#allocation4], 4294967168 }
 0x1c9   :  { %1329 = dma.done.wait [#allocation5], 16  }
 0x1ca   :  { %1330 = vsyncadd [#allocation5], 4294967280 }
 0x1cb   :  { %1056 = sfence }
 0x1cc   :  { %1057 = vsyncpa [#allocation3], 1 }
 0x1cd   :  { %1058 = vsyncpa [#allocation7], 1 }
 0x1ce   :  { %1059 = vsyncpa [#allocation4], 1 }
 0x1cf   :  { %1060 = vsyncpa [#allocation5], 1 }

</bundles_post_ra>
